<compile_context>
chip_gen: v6e
topology: v6e:2x2x1
jax: 0.10.0
libtpu: 0.0.40
codegen_flags: <defaults>
</compile_context>

<pallas_src>
import functools

import jax
import jax.numpy as jnp
from jax.experimental import pallas as pl
from jax.experimental.pallas import tpu as pltpu

_LANE = 128                              # vreg lane count (all generations)
_SUBLANE = 8                             # f32 sublane count
_MAX_TILE_B = 32 * 1024                  # hard cap on lanes per grid step
_VMEM_BUDGET_BYTES = 18 * 1024 * 1024    # blocks + elementwise temporaries
_VMEM_LIMIT_BYTES = 32 * 1024 * 1024     # explicit scoped-VMEM limit (v5e/v6e/v7x safe)


def _round_up(x, m):
    return ((x + m - 1) // m) * m


def _kernel_bdim_major(t_ref, w_ref, b_ref, o_ref, *, is_sin):
    """Fused kernel: computes in (dim_pad, TILE_B), stores (TILE_B, dim)-major."""
    t = t_ref[...]                       # (1, TILE_B)   lane-dense times
    w = w_ref[...]                       # (dim_pad, 1)  resident across steps
    b = b_ref[...]                       # (dim_pad, 1)  resident across steps
    # Linear(1, dim): contraction dim is 1 -> pure VPU broadcast FMA, no MXU.
    x = w * t + b                        # (dim_pad, TILE_B)
    fx = jnp.sin(x) if is_sin else jnp.cos(x)   # VALU polynomial (not EUP)
    # Row 0 is the linear feature; rows >= 1 are periodic.  Selecting here
    # (iota + cmp + select, ~3 VPU ops/vreg) is cheaper than fixing column 0
    # with a separate 1-lane store after the transpose.
    row = jax.lax.broadcasted_iota(jnp.int32, x.shape, 0)
    y = jnp.where(row == 0, x, fx)
    # XLU transpose to (TILE_B, dim_pad); drop the dim padding on the store.
    yt = y.T
    o_ref[...] = yt[:, : o_ref.shape[1]].astype(o_ref.dtype)


def _kernel_dimb_major(t_ref, w_ref, b_ref, o_ref, *, is_sin):
    """Fallback kernel: stores (dim_pad, TILE_B)-major; wrapper transposes."""
    t = t_ref[...]
    w = w_ref[...]
    b = b_ref[...]
    x = w * t + b                                # (dim_pad, TILE_B)
    fx = jnp.sin(x) if is_sin else jnp.cos(x)
    o_ref[...] = fx.astype(o_ref.dtype)
    # Linear row fix: full-lane-width single-sublane overwrite -- no mask
    # operand, no compare, no select.
    o_ref[0:1, :] = x[0:1, :].astype(o_ref.dtype)


def _pick_tile_cap(dim, out_dtype):
    """Largest TILE_B (multiple of 128) whose VMEM working set fits the budget."""
    out_item = jnp.dtype(out_dtype).itemsize
    dim_pad = _round_up(dim, _SUBLANE)
    lane_pad = _round_up(dim, _LANE)      # (TILE_B, dim) blocks are lane-padded in VMEM
    per_lane_bytes = (
        2 * lane_pad * out_item           # double-buffered output block
        + lane_pad * 4                    # f32 transposed temporary
        + 4 * dim_pad * 4                 # x / f(x) / iota / select temporaries
        + 2 * _SUBLANE * 4                # double-buffered (1, TILE_B) times block
    )
    cap = _VMEM_BUDGET_BYTES // per_lane_bytes
    return max(_LANE, min(_MAX_TILE_B, (cap // _LANE) * _LANE))


def _choose_tiling(batch, dim, out_dtype):
    cap = _pick_tile_cap(dim, out_dtype)
    # v7x megacore: dimension_semantics=("parallel",) shards the batch grid
    # across the two TensorCores, so keep >= 2 grid steps whenever there is
    # enough work to split.  One extra ~0.35us step is noise on 1-TC v5e/v6e.
    min_steps = 2 if batch > 1024 else 1
    n_steps = max(min_steps, pl.cdiv(batch, cap))
    tile_b = min(cap, _round_up(pl.cdiv(batch, n_steps), _LANE))
    grid_b = pl.cdiv(batch, tile_b)
    return tile_b, grid_b


_FUSED_STORE_OK = True   # flipped off if the (B, dim)-major store fails to lower


def time2vec2d(times, weight, bias, *, is_sin=True, out_dtype=jnp.float32,
               fused_store=None):
    """Time2Vec2d forward.

    times: (B, 1) or (B,);  weight: (dim, 1) [nn.Linear layout];  bias: (dim,).
    Returns (B, dim) in `out_dtype` (float32 matches the PyTorch module; pass
    jnp.bfloat16 to halve HBM write traffic if the consumer tolerates it).
    fused_store: None = auto, True = in-kernel (B, dim)-major store,
    False = (dim, B)-major kernel + XLA transpose (may be preferable on v5e).
    """
    global _FUSED_STORE_OK
    batch = times.shape[0]
    dim = weight.shape[0]
    assert dim > 1, "dim must be >= 2 (1 linear + >= 1 periodic feature)"
    dim_pad = _round_up(dim, _SUBLANE)   # keeps the in-kernel transpose aligned

    tile_b, grid_b = _choose_tiling(batch, dim, out_dtype)
    b_pad = grid_b * tile_b              # times padded so input blocks are full

    t_row = jnp.pad(times.reshape(-1).astype(jnp.float32), (0, b_pad - batch))
    t_row = t_row.reshape(1, b_pad)
    w_col = jnp.pad(weight.reshape(dim, 1).astype(jnp.float32),
                    ((0, dim_pad - dim), (0, 0)))
    b_col = jnp.pad(bias.reshape(dim, 1).astype(jnp.float32),
                    ((0, dim_pad - dim), (0, 0)))

    out_item = jnp.dtype(out_dtype).itemsize
    cost = pl.CostEstimate(
        flops=2 * batch * dim,
        transcendentals=batch * (dim - 1),
        bytes_accessed=4 * batch + 8 * dim + batch * dim * out_item,
    )
    params = pltpu.CompilerParams(
        dimension_semantics=("parallel",),
        vmem_limit_bytes=_VMEM_LIMIT_BYTES,
    )
    in_specs = [
        pl.BlockSpec((1, tile_b), lambda i: (0, i)),      # times (lane-dense)
        pl.BlockSpec((dim_pad, 1), lambda i: (0, 0)),     # weight (resident)
        pl.BlockSpec((dim_pad, 1), lambda i: (0, 0)),     # bias   (resident)
    ]

    use_fused = _FUSED_STORE_OK if fused_store is None else fused_store
    if use_fused:
        fused_call = pl.pallas_call(
            functools.partial(_kernel_bdim_major, is_sin=is_sin),
            out_shape=jax.ShapeDtypeStruct((batch, dim), out_dtype),
            grid=(grid_b,),
            in_specs=in_specs,
            # Partial last block (batch % tile_b != 0) is clipped by Pallas on
            # writeback, so no external slice is needed.
            out_specs=pl.BlockSpec((tile_b, dim), lambda i: (i, 0)),
            compiler_params=params,
            cost_estimate=cost,
        )
        try:
            return fused_call(t_row, w_col, b_col)
        except Exception:
            if fused_store:           # explicitly requested: surface the error
                raise
            _FUSED_STORE_OK = False   # auto mode: remember and fall back

    out_t = pl.pallas_call(
        functools.partial(_kernel_dimb_major, is_sin=is_sin),
        out_shape=jax.ShapeDtypeStruct((dim_pad, b_pad), out_dtype),
        grid=(grid_b,),
        in_specs=in_specs,
        out_specs=pl.BlockSpec((dim_pad, tile_b), lambda i: (0, i)),
        compiler_params=params,
        cost_estimate=cost,
    )(t_row, w_col, b_col)
    # Layout plumbing in plain JAX; only reached on the fallback path.
    return out_t[:dim, :batch].T


def time2vec2d_ref(times, weight, bias, *, is_sin=True):
    """Pure-JAX reference mirroring the PyTorch forward."""
    x = times.reshape(-1, 1) @ weight.reshape(-1, 1).T + bias      # (B, dim)
    f = jnp.sin if is_sin else jnp.cos
    return jnp.concatenate([x[:, :1], f(x[:, 1:])], axis=1)


if __name__ == "__main__":
    root = jax.random.PRNGKey(0)

    def make_inputs(key, batch, dim):
        kt, kw, kb = jax.random.split(key, 3)
        times = jax.random.normal(kt, (batch, 1), dtype=jnp.float32)
        # nn.Linear(1, dim) init: U(-1, 1) since fan_in == 1.
        weight = jax.random.uniform(kw, (dim, 1), minval=-1.0, maxval=1.0,
                                    dtype=jnp.float32)
        bias = jax.random.uniform(kb, (dim,), minval=-1.0, maxval=1.0,
                                  dtype=jnp.float32)
        return times, weight, bias

    checks = [
        (256, 32, True),    # exact tiles, single grid step
        (2600, 48, True),   # multi-step "parallel" grid + partial last block
        (300, 34, False),   # cos variant, dim % 8 != 0, oversized last tile
    ]
    for idx, (batch, dim, is_sin) in enumerate(checks):
        times, weight, bias = make_inputs(jax.random.fold_in(root, idx),
                                          batch, dim)
        out = jax.block_until_ready(
            time2vec2d(times, weight, bias, is_sin=is_sin))
        ref = time2vec2d_ref(times, weight, bias, is_sin=is_sin)
        assert out.shape == (batch, dim)
        assert jnp.allclose(out, ref, atol=1e-5, rtol=1e-5), (batch, dim, is_sin)

    print("KERNEL_OK")
</pallas_src>

<mosaic_0001>
module attributes {stable_mosaic.version = 11 : i64} {
  func.func @_kernel_bdim_major(%arg0: i32, %arg1: memref<1x256xf32, #tpu.memory_space<vmem>>, %arg2: memref<32x1xf32, #tpu.memory_space<vmem>>, %arg3: memref<32x1xf32, #tpu.memory_space<vmem>>, %arg4: memref<256x32xf32, #tpu.memory_space<vmem>>) attributes {dimension_semantics = [#tpu.dimension_semantics<parallel>], iteration_bounds = array<i64: 1>, scalar_prefetch = 0 : i64, scratch_operands = 0 : i64, tpu.core_type = #tpu.core_type<tc>, window_params = [{transform_indices = @transform_0, window_bounds = array<i64: 1, 256>}, {pipeline_mode = #tpu.pipeline_mode<synchronous>, transform_indices = @transform_1, window_bounds = array<i64: 32, 1>}, {pipeline_mode = #tpu.pipeline_mode<synchronous>, transform_indices = @transform_2, window_bounds = array<i64: 32, 1>}, {transform_indices = @transform_3, window_bounds = array<i64: 256, 32>}]} {
    %c0 = arith.constant 0 : index
    %c0_0 = arith.constant 0 : index
    %0 = vector.load %arg1[%c0, %c0_0] : memref<1x256xf32, #tpu.memory_space<vmem>>, vector<1x256xf32>
    %c0_1 = arith.constant 0 : index
    %c0_2 = arith.constant 0 : index
    %1 = vector.load %arg2[%c0_1, %c0_2] : memref<32x1xf32, #tpu.memory_space<vmem>>, vector<32x1xf32>
    %c0_3 = arith.constant 0 : index
    %c0_4 = arith.constant 0 : index
    %2 = vector.load %arg3[%c0_3, %c0_4] : memref<32x1xf32, #tpu.memory_space<vmem>>, vector<32x1xf32>
    %3 = vector.broadcast %1 : vector<32x1xf32> to vector<32x256xf32>
    %4 = vector.broadcast %0 : vector<1x256xf32> to vector<32x256xf32>
    %5 = arith.mulf %3, %4 : vector<32x256xf32>
    %6 = vector.broadcast %2 : vector<32x1xf32> to vector<32x256xf32>
    %7 = arith.addf %5, %6 : vector<32x256xf32>
    %8 = math.sin %7 : vector<32x256xf32>
    %9 = tpu.iota {dimensions = array<i32: 0>} : vector<32x256xi32>
    %c0_i32 = arith.constant 0 : i32
    %10 = vector.broadcast %c0_i32 : i32 to vector<32x256xi32>
    %11 = arith.cmpi eq, %9, %10 : vector<32x256xi32>
    %12 = arith.select %11, %7, %8 : vector<32x256xi1>, vector<32x256xf32>
    %13 = tpu.transpose %12, [1, 0] : vector<32x256xf32> -> vector<256x32xf32>
    %c0_5 = arith.constant 0 : index
    %c0_6 = arith.constant 0 : index
    %14 = vector.load %arg4[%c0_5, %c0_6] : memref<256x32xf32, #tpu.memory_space<vmem>>, vector<256x32xf32>
    tpu.vector_store %arg4[%c0_5, %c0_6], %13 {strides = array<i32>} : memref<256x32xf32, #tpu.memory_space<vmem>>, vector<256x32xf32>,
    return
  }
  func.func @transform_0(%arg0: i32) -> (i32, i32) {
    %c0_i32 = arith.constant 0 : i32
    %c0_i32_0 = arith.constant 0 : i32
    return %c0_i32, %arg0 : i32, i32
  }
  func.func @transform_1(%arg0: i32) -> (i32, i32) {
    %c0_i32 = arith.constant 0 : i32
    %c0_i32_0 = arith.constant 0 : i32
    %c0_i32_1 = arith.constant 0 : i32
    return %c0_i32, %c0_i32_0 : i32, i32
  }
  func.func @transform_2(%arg0: i32) -> (i32, i32) {
    %c0_i32 = arith.constant 0 : i32
    %c0_i32_0 = arith.constant 0 : i32
    %c0_i32_1 = arith.constant 0 : i32
    return %c0_i32, %c0_i32_0 : i32, i32
  }
  func.func @transform_3(%arg0: i32) -> (i32, i32) {
    %c0_i32 = arith.constant 0 : i32
    %c0_i32_0 = arith.constant 0 : i32
    return %arg0, %c0_i32 : i32, i32
  }
}

module attributes {stable_mosaic.version = 11 : i64} {
  func.func @_kernel_dimb_major(%arg0: i32, %arg1: memref<1x256xf32, #tpu.memory_space<vmem>>, %arg2: memref<32x1xf32, #tpu.memory_space<vmem>>, %arg3: memref<32x1xf32, #tpu.memory_space<vmem>>, %arg4: memref<32x256xf32, #tpu.memory_space<vmem>>) attributes {dimension_semantics = [#tpu.dimension_semantics<parallel>], iteration_bounds = array<i64: 1>, scalar_prefetch = 0 : i64, scratch_operands = 0 : i64, tpu.core_type = #tpu.core_type<tc>, window_params = [{transform_indices = @transform_0, window_bounds = array<i64: 1, 256>}, {pipeline_mode = #tpu.pipeline_mode<synchronous>, transform_indices = @transform_1, window_bounds = array<i64: 32, 1>}, {pipeline_mode = #tpu.pipeline_mode<synchronous>, transform_indices = @transform_2, window_bounds = array<i64: 32, 1>}, {transform_indices = @transform_3, window_bounds = array<i64: 32, 256>}]} {
    %c0 = arith.constant 0 : index
    %c0_0 = arith.constant 0 : index
    %0 = vector.load %arg1[%c0, %c0_0] : memref<1x256xf32, #tpu.memory_space<vmem>>, vector<1x256xf32>
    %c0_1 = arith.constant 0 : index
    %c0_2 = arith.constant 0 : index
    %1 = vector.load %arg2[%c0_1, %c0_2] : memref<32x1xf32, #tpu.memory_space<vmem>>, vector<32x1xf32>
    %c0_3 = arith.constant 0 : index
    %c0_4 = arith.constant 0 : index
    %2 = vector.load %arg3[%c0_3, %c0_4] : memref<32x1xf32, #tpu.memory_space<vmem>>, vector<32x1xf32>
    %3 = vector.broadcast %1 : vector<32x1xf32> to vector<32x256xf32>
    %4 = vector.broadcast %0 : vector<1x256xf32> to vector<32x256xf32>
    %5 = arith.mulf %3, %4 : vector<32x256xf32>
    %6 = vector.broadcast %2 : vector<32x1xf32> to vector<32x256xf32>
    %7 = arith.addf %5, %6 : vector<32x256xf32>
    %8 = math.sin %7 : vector<32x256xf32>
    %c0_5 = arith.constant 0 : index
    %c0_6 = arith.constant 0 : index
    %9 = vector.load %arg4[%c0_5, %c0_6] : memref<32x256xf32, #tpu.memory_space<vmem>>, vector<32x256xf32>
    tpu.vector_store %arg4[%c0_5, %c0_6], %8 {strides = array<i32>} : memref<32x256xf32, #tpu.memory_space<vmem>>, vector<32x256xf32>,
    %10 = vector.extract_strided_slice %7 {offsets = [0, 0], sizes = [1, 256], strides = [1, 1]} : vector<32x256xf32> to vector<1x256xf32>
    %c0_7 = arith.constant 0 : index
    %c0_8 = arith.constant 0 : index
    %11 = vector.load %arg4[%c0_7, %c0_8] : memref<32x256xf32, #tpu.memory_space<vmem>>, vector<1x256xf32>
    tpu.vector_store %arg4[%c0_7, %c0_8], %10 {strides = array<i32>} : memref<32x256xf32, #tpu.memory_space<vmem>>, vector<1x256xf32>,
    return
  }
  func.func @transform_0(%arg0: i32) -> (i32, i32) {
    %c0_i32 = arith.constant 0 : i32
    %c0_i32_0 = arith.constant 0 : i32
    return %c0_i32, %arg0 : i32, i32
  }
  func.func @transform_1(%arg0: i32) -> (i32, i32) {
    %c0_i32 = arith.constant 0 : i32
    %c0_i32_0 = arith.constant 0 : i32
    %c0_i32_1 = arith.constant 0 : i32
    return %c0_i32, %c0_i32_0 : i32, i32
  }
  func.func @transform_2(%arg0: i32) -> (i32, i32) {
    %c0_i32 = arith.constant 0 : i32
    %c0_i32_0 = arith.constant 0 : i32
    %c0_i32_1 = arith.constant 0 : i32
    return %c0_i32, %c0_i32_0 : i32, i32
  }
  func.func @transform_3(%arg0: i32) -> (i32, i32) {
    %c0_i32 = arith.constant 0 : i32
    %c0_i32_0 = arith.constant 0 : i32
    return %c0_i32, %arg0 : i32, i32
  }
}

</mosaic_0001>

<bundles_post_ra>
// kernel: tpu_custom_call.1
= control target key start
LH: loop header
LB: loop body
LE: loop exit
PB: predicated region body
PF: predicated region fallthrough
CT: control target
= control target key end

     0   :  { %v1146_v0 = vmov 0   ;;  %v44_v9 = vlaneseq  ;;  %v2086_v53 = vmov 683565275   ;;  %v2073_v55 = vmov 2475754826   ;;  %s2058_s1 = inlined_call_operand.vmem [shape: f32[32,1], index: 1, kind: input, shape index: {}]   ;;  %s2059_s2 = inlined_call_operand.vmem [shape: f32[32,1], index: 2, kind: input, shape index: {}]   ;;  %s2060_s0 = inlined_call_operand.vmem [shape: f32[1,256], index: 0, kind: input, shape index: {}]   ;;  %s2061_s3 = inlined_call_operand.vmem [shape: f32[256,32], index: 3, kind: output, shape index: {}]  }
   0x1   :  { %1113 = vset.pattern.permute.xlu1 %v1146_v0  ;;  %1112 = vset.pattern.permute.xlu0 %v1146_v0  ;;  %v16_v1 = vld [vmem:[%s2058_s1 + $0x8] sm:$0xff]  ;;  %v15_v2 = vld [vmem:[%s2058_s1] sm:$0xff]  ;;  %v17_v3 = vld [vmem:[%s2058_s1 + $0x10] sm:$0xff]  ;;  %v2069_v57 = vmov 2131351028  }
   0x2   :  { %30 = vperm.xlu1 %1113, %v16_v1   ;;  %25 = vperm.xlu0 %1112, %v15_v2   ;;  %v19_v4 = vld [vmem:[%s2059_s2] sm:$0xff]  ;;  %v18_v5 = vld [vmem:[%s2058_s1 + $0x18] sm:$0xff]  ;;  %v20_v6 = vld [vmem:[%s2059_s2 + $0x8] sm:$0xff]  ;;  %v1197_v10 = vshrl.u32 %v44_v9, 7  ;;  %v2071_v59 = vmov 2102212464  }
   0x3   :  { %v22_v7 = vld [vmem:[%s2059_s2 + $0x18] sm:$0xff]  ;;  %v21_v8 = vld [vmem:[%s2059_s2 + $0x10] sm:$0xff]  ;;  %v14_v15 = vld [vmem:[%s2060_s0] sm:$0x3]  ;;  %v2078_v0 = vmov 920167782  }
   0x4   :  { %2090 = vst [vmem:[#allocation2_spill] sm:$0xff] %v1197_v10  ;;  %v46_v11 = vsub.s32 0, %v1197_v10  ;;  %v50_v12 = vsub.s32 1, %v1197_v10 }
   0x6   :  { %35 = vperm.xlu1 %1113, %v17_v3   ;;  %64 = vperm.xlu0 %1112, %v19_v4   ;;  %v1206_v16 = vrot.slane %v14_v15, %v46_v11  ;;  %v1208_v17 = vrot.slane %v14_v15, %v50_v12  ;;  %v2076_v4 = vmov 1326507024  }
   0xa   :  { %40 = vperm.xlu1 %1113, %v18_v5   ;;  %69 = vperm.xlu0 %1112, %v20_v6  }
   0xe   :  { %79 = vperm.xlu1 %1113, %v22_v7   ;;  %74 = vperm.xlu0 %1112, %v21_v8  }
  0x7d   :  { %v31_v13 = vpop.permute.xlu1 %30  ;;  %v1201_v14 = vpop.permute.xlu0 %25 }
  0x7e   :  { %v56_v20 = vmul.f32 %v1206_v16, %v31_v13  ;;  %v57_v21 = vmul.f32 %v1208_v17, %v31_v13 }
  0x81   :  { %v1210_v18 = vpop.permute.xlu1 %35  ;;  %v1212_v19 = vpop.permute.xlu0 %64 }
  0x85   :  { %v41_v22 = vpop.permute.xlu1 %40  ;;  %v70_v23 = vpop.permute.xlu0 %69 }
  0x86   :  { %v1216_v24 = vadd.f32 %v70_v23, %v56_v20  ;;  %v1218_v25 = vadd.f32 %v70_v23, %v57_v21  ;;  %v60_v31 = vmul.f32 %v1206_v16, %v41_v22  ;;  %v1236_v46 = vmul.f32 %v1208_v17, %v41_v22 }
  0x88   :  { %v2066_v26 = vand.u32 2147483647, %v1216_v24  ;;  %v301_v27 = vand.u32 2139095040, %v1216_v24  ;;  %v2067_v28 = vand.u32 2147483647, %v1218_v25  ;;  %v405_v29 = vand.u32 2139095040, %v1218_v25 }
  0x89   :  { %v1224_v30 = vpop.permute.xlu1 %79 }
  0x8a   :  { %v302_v32 = vshrl.u32 %v301_v27, 23  ;;  %v305_v33 = vand.u32 8388607, %v2066_v26  ;;  %v406_v34 = vshrl.u32 %v405_v29, 23  ;;  %v409_v36 = vand.u32 8388607, %v2067_v28 }
  0x8b   :  { %v1232_v37 = vadd.f32 %v1224_v30, %v60_v31 }
  0x8c   :  { %v1048_v35 = vadd.s32 4294967169, %v302_v32  ;;  %v1052_v39 = vadd.s32 4294967169, %v406_v34  ;;  %v306_v40 = vor.u32 8388608, %v305_v33  ;;  %v410_v41 = vor.u32 8388608, %v409_v36 }
  0x8d   :  { %v717_v43 = vand.u32 2139095040, %v1232_v37 }
  0x8e   :  { %v308_v38 = vadd.s32 1, %v1048_v35  ;;  %v412_v42 = vadd.s32 1, %v1052_v39  ;;  %v1238_v48 = vshll.u32 %v306_v40, 8  ;;  %v1240_v51 = vshll.u32 %v410_v41, 8 }
  0x8f   :  { %v718_v52 = vshrl.u32 %v717_v43, 23 }
  0x90   :  { %vm309_vm0 = vcmp.gt.s32.totalorder %v308_v38, 0  ;;  %vm413_vm1 = vcmp.gt.s32.totalorder %v412_v42, 0 }
  0x91   :  { %v310_v44 = vsel %vm309_vm0, %v308_v38, 0  ;;  %v414_v50 = vsel %vm413_vm1, %v412_v42, 0  ;;  %v1064_v38 = vadd.s32 4294967169, %v718_v52 }
  0x92   :  { %v312_v45 = vand.u32 31, %v310_v44  ;;  %v311_v47 = vshrl.u32 %v310_v44, 5  ;;  %v416_v12 = vand.u32 31, %v414_v50  ;;  %v415_v33 = vshrl.u32 %v414_v50, 5 }
  0x94   :  { %v313_v49 = vsub.s32 32, %v312_v45  ;;  %v315_v54 = vshll.u32 %v2086_v53, %v312_v45  ;;  %v318_v56 = vshll.u32 %v2073_v55, %v312_v45  ;;  %v321_v58 = vshll.u32 %v2069_v57, %v312_v45 }
  0x95   :  { %v324_v60 = vshll.u32 %v2071_v59, %v312_v45  ;;  %v327_v1 = vshll.u32 %v2078_v0, %v312_v45  ;;  %vm330_vm2 = vcmp.lt.s32.totalorder %v311_v47, 1  ;;  %vm332_vm3 = vcmp.lt.s32.totalorder %v311_v47, 3 }
  0x96   :  { %v316_v61 = vshrl.u32 %v2073_v55, %v313_v49  ;;  %v319_v62 = vshrl.u32 %v2069_v57, %v313_v49  ;;  %v322_v63 = vshrl.u32 %v2071_v59, %v313_v49  ;;  %v314_v2 = vshrl.u32 %v2086_v53, %v313_v49 }
  0x97   :  { %v325_v3 = vshrl.u32 %v2078_v0, %v313_v49  ;;  %v328_v5 = vshrl.u32 %v2076_v4, %v313_v49  ;;  %vm333_vm4 = vcmp.lt.s32.totalorder %v311_v47, 4  ;;  %v417_v29 = vsub.s32 32, %v416_v12 }
  0x98   :  { %v317_v6 = vor.u32 %v316_v61, %v315_v54  ;;  %v320_v7 = vor.u32 %v319_v62, %v318_v56  ;;  %v323_v8 = vor.u32 %v322_v63, %v321_v58  ;;  %vm331_vm5 = vcmp.lt.s32.totalorder %v311_v47, 2 }
  0x99   :  { %v326_v9 = vor.u32 %v325_v3, %v324_v60  ;;  %v329_v11 = vor.u32 %v328_v5, %v327_v1  ;;  %v419_v43 = vshll.u32 %v2086_v53, %v416_v12  ;;  %v420_v44 = vshrl.u32 %v2073_v55, %v417_v29 }
  0x9a   :  { %v334_v13 = vsel %vm330_vm2, %v314_v2, %v317_v6  ;;  %v335_v15 = vsel %vm333_vm4, %v323_v8, 2102212464  ;;  %v338_v20 = vsel %vm330_vm2, %v317_v6, %v320_v7  ;;  %v342_v21 = vsel %vm330_vm2, %v320_v7, %v323_v8 }
  0x9b   :  { %v336_v22 = vsel %vm332_vm3, %v320_v7, %v335_v15  ;;  %v339_v23 = vsel %vm333_vm4, %v326_v9, 920167782  ;;  %v343_v27 = vsel %vm333_vm4, %v329_v11, 1326507024  ;;  %v422_v45 = vshll.u32 %v2073_v55, %v416_v12 }
  0x9c   :  { %v340_v31 = vsel %vm332_vm3, %v323_v8, %v339_v23  ;;  %v344_v32 = vsel %vm332_vm3, %v326_v9, %v343_v27  ;;  %v337_v34 = vsel %vm331_vm5, %v334_v13, %v336_v22  ;;  %v423_v47 = vshrl.u32 %v2069_v57, %v417_v29 }
  0x9d   :  { %v341_v35 = vsel %vm331_vm5, %v338_v20, %v340_v31  ;;  %v345_v36 = vsel %vm331_vm5, %v342_v21, %v344_v32  ;;  %v425_v49 = vshll.u32 %v2069_v57, %v416_v12  ;;  %v426_v50 = vshrl.u32 %v2071_v59, %v417_v29 }
  0x9e   :  { %v1254_v39 = vmul.u32.u64.low %v1238_v48, %v345_v36  ;;  %v1255_v40 = vmul.u32.u64.high %v1238_v48, %v345_v36, %v1254_v39  ;;  %v1258_v41 = vmul.u32.u64.low %v1238_v48, %v341_v35  ;;  %v1259_v42 = vmul.u32.u64.high %v1238_v48, %v341_v35, %v1258_v41 }
  0x9f   :  { %v428_v52 = vshll.u32 %v2071_v59, %v416_v12  ;;  %v429_v54 = vshrl.u32 %v2078_v0, %v417_v29  ;;  %v421_v56 = vor.u32 %v420_v44, %v419_v43  ;;  %v424_v58 = vor.u32 %v423_v47, %v422_v45 }
  0xa0   :  { %v431_v60 = vshll.u32 %v2078_v0, %v416_v12  ;;  %v432_v61 = vshrl.u32 %v2076_v4, %v417_v29  ;;  %v353_v62 = vmul.u32 %v1238_v48, %v337_v34  ;;  %vm355_vm6 = vc.u32 %v1255_v40, %v1258_v41 }
  0xa1   :  { %v356_v63 = vadd.s32 1, %v1259_v42  ;;  %v427_v1 = vor.u32 %v426_v50, %v425_v49  ;;  %v418_v2 = vshrl.u32 %v2086_v53, %v417_v29  ;;  %v430_v3 = vor.u32 %v429_v54, %v428_v52 }
  0xa2   :  { %v433_v5 = vor.u32 %v432_v61, %v431_v60  ;;  %vm434_vm7 = vcmp.lt.s32.totalorder %v415_v33, 1  ;;  %vm435_vm8 = vcmp.lt.s32.totalorder %v415_v33, 2  ;;  %vm437_vm9 = vcmp.lt.s32.totalorder %v415_v33, 4 }
  0xa3   :  { %v357_v6 = vsel %vm355_vm6, %v356_v63, %v1259_v42  ;;  %v442_v7 = vsel %vm434_vm7, %v421_v56, %v424_v58  ;;  %vm436_vm10 = vcmp.lt.s32.totalorder %v415_v33, 3  ;;  %v439_v8 = vsel %vm437_vm9, %v427_v1, 2102212464 }
  0xa4   :  { %v443_v9 = vsel %vm437_vm9, %v430_v3, 920167782  ;;  %v446_v48 = vsel %vm434_vm7, %v424_v58, %v427_v1  ;;  %v358_v11 = vadd.s32 %v357_v6, %v353_v62  ;;  %v447_v13 = vsel %vm437_vm9, %v433_v5, 1326507024 }
  0xa5   :  { %v444_v12 = vsel %vm436_vm10, %v427_v1, %v443_v9  ;;  %v724_v15 = vadd.s32 1, %v1064_v38  ;;  %v438_v20 = vsel %vm434_vm7, %v418_v2, %v421_v56  ;;  %v440_v21 = vsel %vm436_vm10, %v424_v58, %v439_v8 }
  0xa6   :  { %v445_v22 = vsel %vm435_vm8, %v442_v7, %v444_v12  ;;  %v448_v23 = vsel %vm436_vm10, %v430_v3, %v447_v13  ;;  %v1291_v35 = vadd.f32 %v1224_v30, %v1236_v46  ;;  %v359_v36 = vadd.s32 536870912, %v358_v11 }
  0xa7   :  { %v449_v27 = vsel %vm435_vm8, %v446_v48, %v448_v23  ;;  %v1281_v29 = vmul.u32.u64.low %v1240_v51, %v445_v22  ;;  %v1282_v31 = vmul.u32.u64.high %v1240_v51, %v445_v22, %v1281_v29  ;;  %vm725_vm11 = vcmp.gt.s32.totalorder %v724_v15, 0 }
  0xa8   :  { %v1286_v32 = vmul.u32.u64.low %v1240_v51, %v449_v27  ;;  %v1287_v34 = vmul.u32.u64.high %v1240_v51, %v449_v27, %v1286_v32  ;;  %v441_v38 = vsel %vm435_vm8, %v438_v20, %v440_v21  ;;  %v2062_v39 = vand.u32 2147483647, %v1232_v37 }
  0xa9   :  { %v726_v42 = vsel %vm725_vm11, %v724_v15, 0  ;;  %v54_v44 = vmul.f32 %v1206_v16, %v1201_v14  ;;  %v460_v45 = vadd.s32 1, %v1282_v31  ;;  %v457_v47 = vmul.u32 %v1240_v51, %v441_v38 }
  0xaa   :  { %v728_v43 = vand.u32 31, %v726_v42  ;;  %vm459_vm12 = vc.u32 %v1287_v34, %v1281_v29  ;;  %v821_v46 = vand.u32 2139095040, %v1291_v35  ;;  %v1302_v49 = vshrl.u32 %v359_v36, 30 }
  0xab   :  { %v461_v33 = vsel %vm459_vm12, %v460_v45, %v1282_v31  ;;  %v721_v50 = vand.u32 8388607, %v2062_v39  ;;  %v1307_v52 = vshrl.u32 %v726_v42, 5  ;;  %v55_v48 = vmul.f32 %v1208_v17, %v1201_v14 }
  0xac   :  { %v729_v30 = vsub.s32 32, %v728_v43  ;;  %v462_v54 = vadd.s32 %v461_v33, %v457_v47  ;;  %v731_v56 = vshll.u32 %v2086_v53, %v728_v43  ;;  %v734_v58 = vshll.u32 %v2073_v55, %v728_v43 }
  0xad   :  { %v740_v62 = vshll.u32 %v2071_v59, %v728_v43  ;;  %v737_v3 = vshll.u32 %v2069_v57, %v728_v43  ;;  %v822_v5 = vshrl.u32 %v821_v46, 23  ;;  %v743_v8 = vshll.u32 %v2078_v0, %v728_v43 }
  0xae   :  { %v732_v51 = vshrl.u32 %v2073_v55, %v729_v30  ;;  %v735_v60 = vshrl.u32 %v2069_v57, %v729_v30  ;;  %v738_v61 = vshrl.u32 %v2071_v59, %v729_v30  ;;  %v741_v63 = vshrl.u32 %v2078_v0, %v729_v30 }
  0xaf   :  { %v463_v1 = vadd.s32 536870912, %v462_v54  ;;  %v744_v9 = vshrl.u32 %v2076_v4, %v729_v30  ;;  %v361_v12 = vshll.u32 %v1302_v49, 30  ;;  %v1325_v20 = vadd.f32 %v1212_v19, %v54_v44 }
  0xb0   :  { %v733_v2 = vor.u32 %v732_v51, %v731_v56  ;;  %v736_v6 = vor.u32 %v735_v60, %v734_v58  ;;  %v742_v7 = vor.u32 %v741_v63, %v740_v62  ;;  %v739_v15 = vor.u32 %v738_v61, %v737_v3 }
  0xb1   :  { %v1322_v13 = vshrl.u32 %v463_v1, 30  ;;  %v722_v21 = vor.u32 8388608, %v721_v50  ;;  %v745_v22 = vor.u32 %v744_v9, %v743_v8  ;;  %vm746_vm13 = vcmp.lt.s32.totalorder %v1307_v52, 1 }
  0xb2   :  { %v1329_v23 = vadd.f32 %v1212_v19, %v55_v48  ;;  %vm749_vm14 = vcmp.lt.s32.totalorder %v1307_v52, 4  ;;  %v754_v14 = vsel %vm746_vm13, %v733_v2, %v736_v6  ;;  %vm748_vm15 = vcmp.lt.s32.totalorder %v1307_v52, 3 }
  0xb3   :  { %v465_v27 = vshll.u32 %v1322_v13, 30  ;;  %v755_v31 = vsel %vm749_vm14, %v742_v7, 920167782  ;;  %v759_v32 = vsel %vm749_vm14, %v745_v22, 1326507024  ;;  %v1068_v36 = vadd.s32 4294967169, %v822_v5  ;;  %v75_v22 = vpop.permute.xlu0 %74 }
  0xb4   :  { %v1340_v38 = vsub.s32 %v358_v11, %v361_v12  ;;  %vm747_vm0 = vcmp.lt.s32.totalorder %v1307_v52, 2  ;;  %v756_v19 = vsel %vm748_vm15, %v739_v15, %v755_v31  ;;  %v758_v42 = vsel %vm746_vm13, %v736_v6, %v739_v15 }
  0xb5   :  { %v757_v43 = vsel %vm747_vm0, %v754_v14, %v756_v19  ;;  %v760_v44 = vsel %vm748_vm15, %v742_v7, %v759_v32  ;;  %v762_v45 = vshll.u32 %v722_v21, 8  ;;  %v93_v47 = vand.u32 2139095040, %v1325_v20 }
  0xb6   :  { %v1352_v46 = vsub.s32 %v462_v54, %v465_v27  ;;  %v761_v11 = vsel %vm747_vm0, %v758_v42, %v760_v44  ;;  %v828_v56 = vadd.s32 1, %v1068_v36  ;;  %v197_v51 = vand.u32 2139095040, %v1329_v23 }
  0xb7   :  { %v1356_v33 = vmul.u32.u64.low %v762_v45, %v757_v43  ;;  %v1357_v50 = vmul.u32.u64.high %v762_v45, %v757_v43, %v1356_v33  ;;  %v364_v58 = vsub.s32 0, %v1340_v38  ;;  %v751_v60 = vsel %vm749_vm14, %v739_v15, 2102212464 }
  0xb8   :  { %v2065_v61 = vand.u32 2147483647, %v1291_v35  ;;  %v730_v54 = vshrl.u32 %v2086_v53, %v729_v30  ;;  %v1366_v62 = vmul.u32.u64.low %v762_v45, %v761_v11  ;;  %v1367_v63 = vmul.u32.u64.high %v762_v45, %v761_v11, %v1366_v62 }
  0xb9   :  { %vm829_vm1 = vcmp.gt.s32.totalorder %v828_v56, 0  ;;  %v94_v1 = vshrl.u32 %v93_v47, 23  ;;  %v468_v5 = vsub.s32 0, %v1352_v46  ;;  %v752_v8 = vsel %vm748_vm15, %v736_v6, %v751_v60 }
  0xba   :  { %v830_v3 = vsel %vm829_vm1, %v828_v56, 0  ;;  %v750_v7 = vsel %vm746_vm13, %v730_v54, %v733_v2  ;;  %v198_v48 = vshrl.u32 %v197_v51, 23  ;;  %v825_v12 = vand.u32 8388607, %v2065_v61 }
  0xbb   :  { %v832_v9 = vand.u32 31, %v830_v3  ;;  %v1049_v30 = vmin.u32 %v364_v58, %v1340_v38  ;;  %v772_v15 = vadd.s32 1, %v1357_v50  ;;  %v58_v27 = vmul.f32 %v1206_v16, %v1210_v18 }
  0xbc   :  { %v59_v2 = vmul.f32 %v1208_v17, %v1210_v18  ;;  %v753_v6 = vsel %vm747_vm0, %v750_v7, %v752_v8  ;;  %vm771_vm2 = vc.u32 %v1367_v63, %v1356_v33  ;;  %v1040_v14 = vadd.s32 4294967169, %v94_v1 }
  0xbd   :  { %v833_v21 = vsub.s32 32, %v832_v9  ;;  %v1053_v31 = vmin.u32 %v468_v5, %v1352_v46  ;;  %v2068_v32 = vand.u32 2147483647, %v1329_v23  ;;  %v2064_v36 = vand.u32 2147483647, %v1325_v20 }
  0xbe   :  { %v1044_v19 = vadd.s32 4294967169, %v198_v48  ;;  %v826_v42 = vor.u32 8388608, %v825_v12  ;;  %v1390_v43 = vadd.f32 %v75_v22, %v58_v27  ;;  %v366_v17 = vclz %v1049_v30 }
  0xbf   :  { %v836_v16 = vshrl.u32 %v2073_v55, %v833_v21  ;;  %v769_v18 = vmul.u32 %v762_v45, %v753_v6  ;;  %v773_v52 = vsel %vm771_vm2, %v772_v15, %v1357_v50  ;;  %v839_v44 = vshrl.u32 %v2069_v57, %v833_v21 }
  0xc0   :  { %v835_v47 = vshll.u32 %v2086_v53, %v832_v9  ;;  %v838_v11 = vshll.u32 %v2073_v55, %v832_v9  ;;  %v841_v56 = vshll.u32 %v2069_v57, %v832_v9  ;;  %v842_v51 = vshrl.u32 %v2071_v59, %v833_v21 }
  0xc1   :  { %v470_v58 = vclz %v1053_v31  ;;  %v831_v60 = vshrl.u32 %v830_v3, 5  ;;  %v844_v54 = vshll.u32 %v2071_v59, %v832_v9  ;;  %v845_v62 = vshrl.u32 %v2078_v0, %v833_v21 }
  0xc2   :  { %v1400_v1 = vadd.s32 %v773_v52, %v769_v18  ;;  %v837_v45 = vor.u32 %v836_v16, %v835_v47  ;;  %v840_v50 = vor.u32 %v839_v44, %v838_v11  ;;  %v843_v5 = vor.u32 %v842_v51, %v841_v56 }
  0xc3   :  { %v100_v7 = vadd.s32 1, %v1040_v14  ;;  %v846_v8 = vor.u32 %v845_v62, %v844_v54  ;;  %v847_v48 = vshll.u32 %v2078_v0, %v832_v9  ;;  %v848_v12 = vshrl.u32 %v2076_v4, %v833_v21 }
  0xc4   :  { %v204_v30 = vadd.s32 1, %v1044_v19  ;;  %v1050_v15 = vadd.s32 4294967294, %v366_v17  ;;  %v866_v27 = vshll.u32 %v826_v42, 8  ;;  %v1404_v6 = vadd.f32 %v75_v22, %v59_v2 }
  0xc5   :  { %v849_v3 = vor.u32 %v848_v12, %v847_v48  ;;  %vm850_vm3 = vcmp.lt.s32.totalorder %v831_v60, 1  ;;  %vm853_vm4 = vcmp.lt.s32.totalorder %v831_v60, 4  ;;  %v509_v31 = vand.u32 2139095040, %v1390_v43 }
  0xc6   :  { %v1054_v18 = vadd.s32 4294967294, %v470_v58  ;;  %v775_v16 = vadd.s32 536870912, %v1400_v1  ;;  %v855_v52 = vsel %vm853_vm4, %v843_v5, 2102212464  ;;  %v858_v14 = vsel %vm850_vm3, %v837_v45, %v840_v50 }
  0xc7   :  { %v834_v44 = vshrl.u32 %v2086_v53, %v833_v21  ;;  %vm852_vm5 = vcmp.lt.s32.totalorder %v831_v60, 3  ;;  %v859_v9 = vsel %vm853_vm4, %v846_v8, 920167782  ;;  %v862_v47 = vsel %vm850_vm3, %v840_v50, %v843_v5 }
  0xc8   :  { %vm1051_vm6 = vcmp.lt.s32.totalorder %v1050_v15, 0  ;;  %vm851_vm7 = vcmp.lt.s32.totalorder %v831_v60, 2  ;;  %v860_v19 = vsel %vm852_vm5, %v843_v5, %v859_v9  ;;  %v863_v22 = vsel %vm853_vm4, %v849_v3, 1326507024 }
  0xc9   :  { %v854_v2 = vsel %vm850_vm3, %v834_v44, %v837_v45  ;;  %v856_v42 = vsel %vm852_vm5, %v840_v50, %v855_v52  ;;  %v861_v17 = vsel %vm851_vm7, %v858_v14, %v860_v19  ;;  %v864_v11 = vsel %vm852_vm5, %v846_v8, %v863_v22 }
  0xca   :  { %v1409_v56 = vshrl.u32 %v775_v16, 30  ;;  %v865_v51 = vsel %vm851_vm7, %v862_v47, %v864_v11  ;;  %v1411_v58 = vmul.u32.u64.low %v866_v27, %v861_v17  ;;  %v1412_v54 = vmul.u32.u64.high %v866_v27, %v861_v17, %v1411_v58 }
  0xcb   :  { %vm1055_vm8 = vcmp.lt.s32.totalorder %v1054_v18, 0  ;;  %v1415_v21 = vmul.u32.u64.low %v866_v27, %v865_v51  ;;  %v1416_v62 = vmul.u32.u64.high %v866_v27, %v865_v51, %v1415_v21  ;;  %v510_v48 = vshrl.u32 %v509_v31, 23 }
  0xcc   :  { %2091 = vst [vmem:[#allocation3_spill] sm:$0xff] %v1409_v56  ;;  %v857_v12 = vsel %vm851_vm7, %v854_v2, %v856_v42  ;;  %v1420_v60 = vand.u32 8388607, %v2068_v32  ;;  %v1424_v45 = vand.u32 8388607, %v2064_v36  ;;  %vm101_vm9 = vcmp.gt.s32.totalorder %v100_v7, 0 }
  0xcd   :  { %vm205_vm10 = vcmp.gt.s32.totalorder %v204_v30, 0  ;;  %v1427_v50 = vsel %vm1051_vm6, 0, %v1050_v15  ;;  %v1056_v5 = vadd.s32 4294967169, %v510_v48  ;;  %v473_v8 = vsel %vm1055_vm8, 0, %v1054_v18 }
  0xce   :  { %v777_v3 = vshll.u32 %v1409_v56, 30  ;;  %v876_v31 = vadd.s32 1, %v1412_v54  ;;  %v2063_v16 = vand.u32 2147483647, %v1390_v43  ;;  %v873_v52 = vmul.u32 %v866_v27, %v857_v12 }
  0xcf   :  { %vm875_vm11 = vc.u32 %v1416_v62, %v1411_v58  ;;  %v516_v14 = vadd.s32 1, %v1056_v5  ;;  %v613_v44 = vand.u32 2139095040, %v1404_v6  ;;  %v1435_v9 = vsel %vm101_vm9, %v100_v7, 0 }
  0xd0   :  { %v1437_v47 = vsel %vm205_vm10, %v204_v30, 0  ;;  %v370_v15 = vsub.s32 32, %v1427_v50  ;;  %v877_v18 = vsel %vm875_vm11, %v876_v31, %v1412_v54  ;;  %v374_v19 = vsub.s32 4294967266, %v1427_v50 }
  0xd1   :  { %v474_v22 = vsub.s32 32, %v473_v8  ;;  %v478_v2 = vsub.s32 4294967266, %v473_v8  ;;  %v878_v42 = vadd.s32 %v877_v18, %v873_v52  ;;  %v354_v27 = vadd.s32 %v1258_v41, %v1255_v40 }
  0xd2   :  { %v1445_v17 = vsub.s32 %v1400_v1, %v777_v3  ;;  %v513_v7 = vand.u32 8388607, %v2063_v16  ;;  %vm517_vm12 = vcmp.gt.s32.totalorder %v516_v14, 0  ;;  %v458_v30 = vadd.s32 %v1281_v29, %v1287_v34 }
  0xd3   :  { %v879_v11 = vadd.s32 536870912, %v878_v42  ;;  %v518_v51 = vsel %vm517_vm12, %v516_v14, 0  ;;  %v614_v54 = vshrl.u32 %v613_v44, 23  ;;  %v1452_v21 = vand.u32 31, %v1435_v9 }
  0xd4   :  { %v1455_v48 = vand.u32 31, %v1437_v47  ;;  %v1457_v40 = vshrl.u32 %v354_v27, %v370_v15  ;;  %v520_v41 = vand.u32 31, %v518_v51  ;;  %v1459_v1 = vadd.s32 127, %v374_v19 }
  0xd5   :  { %v475_v12 = vshll.u32 %v1352_v46, %v473_v8  ;;  %v476_v5 = vshrl.u32 %v458_v30, %v474_v22  ;;  %v479_v3 = vadd.s32 127, %v478_v2  ;;  %v780_v29 = vsub.s32 0, %v1445_v17 }
  0xd6   :  { %v514_v34 = vor.u32 8388608, %v513_v7  ;;  %v521_v31 = vsub.s32 32, %v520_v41  ;;  %v2075_v52 = vand.u32 2147483647, %v1404_v6  ;;  %v1464_v14 = vshrl.u32 %v879_v11, 30 }
  0xd7   :  { %v523_v44 = vshll.u32 %v2086_v53, %v520_v41  ;;  %v526_v15 = vshll.u32 %v2073_v55, %v520_v41  ;;  %v1060_v18 = vadd.s32 4294967169, %v614_v54  ;;  %v529_v46 = vshll.u32 %v2069_v57, %v520_v41 }
  0xd8   :  { %2092 = vst [vmem:[#allocation4_spill] sm:$0xff] %v1464_v14  ;;  %v524_v19 = vshrl.u32 %v2073_v55, %v521_v31  ;;  %v527_v27 = vshrl.u32 %v2069_v57, %v521_v31  ;;  %v530_v8 = vshrl.u32 %v2071_v59, %v521_v31  ;;  %v519_v22 = vshrl.u32 %v518_v51, 5 }
  0xd9   :  { %v532_v2 = vshll.u32 %v2071_v59, %v520_v41  ;;  %v533_v7 = vshrl.u32 %v2078_v0, %v521_v31  ;;  %v535_v30 = vshll.u32 %v2078_v0, %v520_v41  ;;  %v536_v54 = vshrl.u32 %v2076_v4, %v521_v31 }
  0xda   :  { %v525_v11 = vor.u32 %v524_v19, %v523_v44  ;;  %v528_v39 = vor.u32 %v527_v27, %v526_v15  ;;  %v531_v16 = vor.u32 %v530_v8, %v529_v46  ;;  %v1476_v36 = vor.u32 %v476_v5, %v475_v12 }
  0xdb   :  { %v480_v61 = vshll.u32 %v479_v3, 23  ;;  %v881_v26 = vshll.u32 %v1464_v14, 30  ;;  %v534_v28 = vor.u32 %v533_v7, %v532_v2  ;;  %v1065_v32 = vmin.u32 %v780_v29, %v1445_v17 }
  0xdc   :  { %v537_v51 = vor.u32 %v536_v54, %v535_v30  ;;  %v554_v57 = vshll.u32 %v514_v34, 8  ;;  %v620_v59 = vadd.s32 1, %v1060_v18  ;;  %v522_v55 = vshrl.u32 %v2086_v53, %v521_v31 }
  0xdd   :  { %vm538_vm13 = vcmp.lt.s32.totalorder %v519_v22, 1  ;;  %vm541_vm14 = vcmp.lt.s32.totalorder %v519_v22, 4  ;;  %v617_v41 = vand.u32 8388607, %v2075_v52  ;;  %vm540_vm15 = vcmp.lt.s32.totalorder %v519_v22, 3 }
  0xde   :  { %v543_v44 = vsel %vm541_vm14, %v531_v16, 2102212464  ;;  %v546_v12 = vsel %vm538_vm13, %v525_v11, %v528_v39  ;;  %v547_v5 = vsel %vm541_vm14, %v534_v28, 920167782  ;;  %v1483_v3 = vsub.s32 %v878_v42, %v881_v26 }
  0xdf   :  { %vm539_vm0 = vcmp.lt.s32.totalorder %v519_v22, 2  ;;  %v548_v15 = vsel %vm540_vm15, %v531_v16, %v547_v5  ;;  %v550_v19 = vsel %vm538_vm13, %v528_v39, %v531_v16  ;;  %v542_v29 = vsel %vm538_vm13, %v522_v55, %v525_v11 }
  0xe0   :  { %v549_v34 = vsel %vm539_vm0, %v546_v12, %v548_v15  ;;  %v551_v18 = vsel %vm541_vm14, %v537_v51, 1326507024  ;;  %vm621_vm1 = vcmp.gt.s32.totalorder %v620_v59, 0  ;;  %v544_v31 = vsel %vm540_vm15, %v528_v39, %v543_v44 }
  0xe1   :  { %v552_v27 = vsel %vm540_vm15, %v534_v28, %v551_v18  ;;  %v1486_v46 = vmul.u32.u64.low %v554_v57, %v549_v34  ;;  %v1487_v8 = vmul.u32.u64.high %v554_v57, %v549_v34, %v1486_v46  ;;  %v782_v2 = vclz %v1065_v32 }
  0xe2   :  { %v553_v7 = vsel %vm539_vm0, %v550_v19, %v552_v27  ;;  %v618_v30 = vor.u32 8388608, %v617_v41  ;;  %v622_v26 = vsel %vm621_vm1, %v620_v59, 0  ;;  %v371_v42 = vshll.u32 %v1340_v38, %v1427_v50 }
  0xe3   :  { %v884_v55 = vsub.s32 0, %v1483_v3  ;;  %v1494_v16 = vmul.u32.u64.low %v554_v57, %v553_v7  ;;  %v1495_v11 = vmul.u32.u64.high %v554_v57, %v553_v7, %v1494_v16  ;;  %v1498_v39 = vshrl.u32 %v1437_v47, 5 }
  0xe4   :  { %v1501_v28 = vsub.s32 32, %v1455_v48  ;;  %v545_v32 = vsel %vm539_vm0, %v542_v29, %v544_v31  ;;  %v624_v54 = vand.u32 31, %v622_v26  ;;  %v1505_v51 = vor.u32 %v1457_v40, %v371_v42 }
  0xe5   :  { %v1508_v38 = vor.u32 4788187, %v480_v61  ;;  %v564_v50 = vadd.s32 1, %v1487_v8  ;;  %v1512_v44 = vadd.s32 4294967294, %v782_v2  ;;  %v1514_v12 = vshll.u32 %v618_v30, 8 }
  0xe6   :  { %v625_v47 = vsub.s32 32, %v624_v54  ;;  %v1517_v22 = vmin.u32 %v884_v55, %v1483_v3  ;;  %v561_v5 = vmul.u32 %v554_v57, %v545_v32  ;;  %vm563_vm2 = vc.u32 %v1495_v11, %v1486_v46 }
  0xe7   :  { %v627_v40 = vshll.u32 %v2086_v53, %v624_v54  ;;  %v565_v61 = vsel %vm563_vm2, %v564_v50, %v1487_v8  ;;  %v2093_v15 = vmov 2475754826   ;;  %v2094_v34 = vmov 2131351028  }
  0xe8   :  { %v628_v19 = vshrl.u32 %v2093_v15, %v625_v47  ;;  %v630_v29 = vshll.u32 %v2093_v15, %v624_v54  ;;  %v631_v18 = vshrl.u32 %v2094_v34, %v625_v47  ;;  %v566_v31 = vadd.s32 %v565_v61, %v561_v5 }
  0xe9   :  { %v623_v27 = vshrl.u32 %v622_v26, 5  ;;  %v633_v2 = vshll.u32 %v2094_v34, %v624_v54  ;;  %v2095_v7 = vmov 2102212464   ;;  %v637_v16 = vshrl.u32 %v2078_v0, %v625_v47 }
  0xea   :  { %v634_v30 = vshrl.u32 %v2095_v7, %v625_v47  ;;  %v629_v57 = vor.u32 %v628_v19, %v627_v40  ;;  %v632_v42 = vor.u32 %v631_v18, %v630_v29  ;;  %v636_v55 = vshll.u32 %v2095_v7, %v624_v54 }
  0xeb   :  { %v567_v32 = vadd.s32 536870912, %v566_v31  ;;  %v211_v50 = vshll.u32 %v2086_v53, %v1455_v48  ;;  %v212_v52 = vshrl.u32 %v2093_v15, %v1501_v28  ;;  %v639_v26 = vshll.u32 %v2078_v0, %v624_v54 }
  0xec   :  { %v635_v8 = vor.u32 %v634_v30, %v633_v2  ;;  %v638_v5 = vor.u32 %v637_v16, %v636_v55  ;;  %v640_v61 = vshrl.u32 %v2076_v4, %v625_v47  ;;  %v214_v40 = vshll.u32 %v2093_v15, %v1455_v48 }
  0xed   :  { %v886_v19 = vclz %v1517_v22  ;;  %v1539_v29 = vshrl.u32 %v567_v32, 30  ;;  %vm642_vm3 = vcmp.lt.s32.totalorder %v623_v27, 1  ;;  %v215_v18 = vshrl.u32 %v2094_v34, %v1501_v28 }
  0xee   :  { %v626_v2 = vshrl.u32 %v2086_v53, %v625_v47  ;;  %v641_v30 = vor.u32 %v640_v61, %v639_v26  ;;  %vm645_vm4 = vcmp.lt.s32.totalorder %v623_v27, 4  ;;  %v650_v55 = vsel %vm642_vm3, %v629_v57, %v632_v42 }
  0xef   :  { %2096 = vst [vmem:[#allocation5_spill] sm:$0xff] %v1539_v29  ;;  %v569_v54 = vshll.u32 %v1539_v29, 30  ;;  %vm644_vm5 = vcmp.lt.s32.totalorder %v623_v27, 3  ;;  %v647_v16 = vsel %vm645_vm4, %v635_v8, 2102212464  ;;  %vm643_vm6 = vcmp.lt.s32.totalorder %v623_v27, 2 }
  0xf0   :  { %v651_v41 = vsel %vm645_vm4, %v638_v5, 920167782  ;;  %v654_v4 = vsel %vm642_vm3, %v632_v42, %v635_v8  ;;  %v655_v22 = vsel %vm645_vm4, %v641_v30, 1326507024  ;;  %v646_v0 = vsel %vm642_vm3, %v626_v2, %v629_v57 }
  0xf1   :  { %v652_v59 = vsel %vm644_vm5, %v635_v8, %v651_v41  ;;  %v1545_v32 = vsub.s32 %v566_v31, %v569_v54  ;;  %v213_v10 = vor.u32 %v212_v52, %v211_v50  ;;  %v648_v14 = vsel %vm644_vm5, %v632_v42, %v647_v16 }
  0xf2   :  { %v653_v56 = vsel %vm643_vm6, %v650_v55, %v652_v59  ;;  %v656_v47 = vsel %vm644_vm5, %v638_v5, %v655_v22  ;;  %v216_v29 = vor.u32 %v215_v18, %v214_v40  ;;  %v217_v41 = vshll.u32 %v2094_v34, %v1455_v48 }
  0xf3   :  { %v1549_v26 = vmul.u32.u64.low %v1514_v12, %v653_v56  ;;  %v1550_v61 = vmul.u32.u64.high %v1514_v12, %v653_v56, %v1549_v26  ;;  %v657_v53 = vsel %vm643_vm6, %v654_v4, %v656_v47  ;;  %v218_v31 = vshrl.u32 %v2095_v7, %v1501_v28 }
  0xf4   :  { %v1559_v57 = vmul.u32.u64.low %v1514_v12, %v657_v53  ;;  %v1560_v59 = vmul.u32.u64.high %v1514_v12, %v657_v53, %v1559_v57  ;;  %v220_v52 = vshll.u32 %v2095_v7, %v1455_v48  ;;  %v2097_v56 = vmov 920167782  }
  0xf5   :  { %v221_v42 = vshrl.u32 %v2097_v56, %v1501_v28  ;;  %v572_v8 = vsub.s32 0, %v1545_v32  ;;  %v649_v4 = vsel %vm643_vm6, %v646_v0, %v648_v14  ;;  %v223_v50 = vshll.u32 %v2097_v56, %v1455_v48 }
  0xf6   :  { %v2098_v5 = vmov 1326507024   ;;  %v482_v18 = vand.u32 2147483647, %v1508_v38  ;;  %v668_v53 = vadd.s32 1, %v1550_v61  ;;  %v219_v2 = vor.u32 %v218_v31, %v217_v41 }
  0xf7   :  { %v224_v40 = vshrl.u32 %v2098_v5, %v1501_v28  ;;  %v222_v30 = vor.u32 %v221_v42, %v220_v52  ;;  %vm1067_vm7 = vcmp.lt.s32.totalorder %v1512_v44, 0  ;;  %v202_v55 = vor.u32 8388608, %v1420_v60 }
  0xf8   :  { %v2099_v54 = vmov 683565275   ;;  %v1070_v14 = vadd.s32 4294967294, %v886_v19  ;;  %v665_v48 = vmul.u32 %v1514_v12, %v649_v4  ;;  %vm667_vm8 = vc.u32 %v1560_v59, %v1549_v26 }
  0xf9   :  { %v210_v27 = vshrl.u32 %v2099_v54, %v1501_v28  ;;  %v225_v0 = vor.u32 %v224_v40, %v223_v50  ;;  %vm226_vm9 = vcmp.lt.s32.totalorder %v1498_v39, 1  ;;  %v1057_v38 = vmin.u32 %v572_v8, %v1545_v32 }
  0xfa   :  { %v669_v16 = vsel %vm667_vm8, %v668_v53, %v1550_v61  ;;  %vm229_vm10 = vcmp.lt.s32.totalorder %v1498_v39, 4  ;;  %v234_v60 = vsel %vm226_vm9, %v213_v10, %v216_v29  ;;  %vm228_vm11 = vcmp.lt.s32.totalorder %v1498_v39, 3 }
  0xfb   :  { %v670_v22 = vadd.s32 %v669_v16, %v665_v48  ;;  %v235_v28 = vsel %vm229_vm10, %v222_v30, 920167782  ;;  %v238_v12 = vsel %vm226_vm9, %v216_v29, %v219_v2  ;;  %vm227_vm12 = vcmp.lt.s32.totalorder %v1498_v39, 2 }
  0xfc   :  { %v231_v19 = vsel %vm229_vm10, %v219_v2, 2102212464  ;;  %v236_v47 = vsel %vm228_vm11, %v219_v2, %v235_v28  ;;  %v239_v41 = vsel %vm229_vm10, %v225_v0, 1326507024  ;;  %v242_v52 = vshll.u32 %v202_v55, 8 }
  0xfd   :  { %v671_v61 = vadd.s32 536870912, %v670_v22  ;;  %v237_v31 = vsel %vm227_vm12, %v234_v60, %v236_v47  ;;  %v240_v57 = vsel %vm228_vm11, %v222_v30, %v239_v41  ;;  %v2100_v42 = vshll.u32 %v1459_v1, 23 }
  0xfe   :  { %v2101_v4 = vcvt.s32.f32 %v1476_v36  ;;  %v230_v40 = vsel %vm226_vm9, %v210_v27, %v213_v10  ;;  %v241_v53 = vsel %vm227_vm12, %v238_v12, %v240_v57  ;;  %v232_v30 = vsel %vm228_vm11, %v216_v29, %v231_v19 }
  0xff   :  { %v1599_v8 = vor.u32 4788187, %v2100_v42  ;;  %v1609_v2 = vshrl.u32 %v671_v61, 30  ;;  %v1613_v55 = vmul.u32.u64.low %v242_v52, %v241_v53  ;;  %v1614_v0 = vmul.u32.u64.high %v242_v52, %v241_v53, %v1613_v55 }
 0x100   :  { %v1603_v50 = vmul.f32 %v2101_v4, %v482_v18  ;;  %v1619_v36 = vsel %vm1067_vm7, 0, %v1512_v44  ;;  %v574_v1 = vclz %v1057_v38  ;;  %v1626_v10 = vshrl.u32 %v1435_v9, 5 }
 0x101   :  { %v1621_v18 = vmul.u32.u64.low %v242_v52, %v237_v31  ;;  %v1622_v48 = vmul.u32.u64.high %v242_v52, %v237_v31, %v1621_v18  ;;  %v105_v27 = vsub.s32 32, %v1452_v21  ;;  %vm1071_vm13 = vcmp.lt.s32.totalorder %v1070_v14, 0 }
 0x102   :  { %v673_v29 = vshll.u32 %v1609_v2, 30  ;;  %v378_v16 = vand.u32 2147483647, %v1599_v8  ;;  %v380_v60 = vcvt.s32.f32 %v1505_v51  ;;  %v1634_v44 = vadd.s32 %v1356_v33, %v1367_v63 }
 0x103   :  { %v233_v38 = vsel %vm227_vm12, %v230_v40, %v232_v30  ;;  %v486_v28 = vxor.u32 2147483648, %v1603_v50  ;;  %vm251_vm14 = vc.u32 %v1614_v0, %v1621_v18  ;;  %v790_v19 = vsub.s32 4294967266, %v1619_v36 }
 0x104   :  { %v1640_v12 = vsub.s32 %v670_v22, %v673_v29  ;;  %v1645_v47 = vsel %vm1071_vm13, 0, %v1070_v14  ;;  %v1058_v41 = vadd.s32 4294967294, %v574_v1  ;;  %v252_v33 = vadd.s32 1, %v1622_v48 }
 0x105   :  { %v249_v39 = vmul.u32 %v242_v52, %v233_v38  ;;  %v108_v61 = vshrl.u32 %v2093_v15, %v105_v27  ;;  %v111_v31 = vshrl.u32 %v2094_v34, %v105_v27  ;;  %v114_v57 = vshrl.u32 %v2095_v7, %v105_v27 }
 0x106   :  { %v676_v63 = vsub.s32 0, %v1640_v12  ;;  %v253_v22 = vsel %vm251_vm14, %v252_v33, %v1622_v48  ;;  %v116_v42 = vshll.u32 %v2095_v7, %v1452_v21  ;;  %v117_v14 = vshrl.u32 %v2097_v56, %v105_v27 }
 0x107   :  { %v254_v40 = vadd.s32 %v253_v22, %v249_v39  ;;  %v107_v53 = vshll.u32 %v2099_v54, %v1452_v21  ;;  %v110_v52 = vshll.u32 %v2093_v15, %v1452_v21  ;;  %v113_v30 = vshll.u32 %v2094_v34, %v1452_v21 }
 0x108   :  { %v1061_v4 = vmin.u32 %v676_v63, %v1640_v12  ;;  %v118_v55 = vor.u32 %v117_v14, %v116_v42  ;;  %v119_v1 = vshll.u32 %v2097_v56, %v1452_v21  ;;  %v120_v7 = vshrl.u32 %v2098_v5, %v105_v27 }
 0x109   :  { %v255_v29 = vadd.s32 536870912, %v254_v40  ;;  %v109_v38 = vor.u32 %v108_v61, %v107_v53  ;;  %v112_v33 = vor.u32 %v111_v31, %v110_v52  ;;  %vm1059_vm15 = vcmp.lt.s32.totalorder %v1058_v41, 0 }
 0x10a   :  { %v678_v48 = vclz %v1061_v4  ;;  %v666_v63 = vadd.s32 %v1549_v26, %v1560_v59  ;;  %v115_v39 = vor.u32 %v114_v57, %v113_v30  ;;  %v121_v22 = vor.u32 %v120_v7, %v119_v1 }
 0x10b   :  { %v1668_v9 = vshrl.u32 %v255_v29, 30  ;;  %v98_v34 = vor.u32 8388608, %v1424_v45  ;;  %vm125_vm0 = vcmp.lt.s32.totalorder %v1626_v10, 4  ;;  %v106_v21 = vshrl.u32 %v2099_v54, %v105_v27 }
 0x10c   :  { %v1062_v15 = vadd.s32 4294967294, %v678_v48  ;;  %vm122_vm1 = vcmp.lt.s32.totalorder %v1626_v10, 1  ;;  %vm123_vm2 = vcmp.lt.s32.totalorder %v1626_v10, 2  ;;  %v131_v56 = vsel %vm125_vm0, %v118_v55, 920167782 }
 0x10d   :  { %vm404_vm3 = vcmp.lt.s32.totalorder %v1218_v25, 0  ;;  %v257_v26 = vshll.u32 %v1668_v9, 30  ;;  %vm124_vm5 = vcmp.lt.s32.totalorder %v1626_v10, 3  ;;  %v130_v59 = vsel %vm122_vm1, %v109_v38, %v112_v33 }
 0x10e   :  { %vm1063_vm4 = vcmp.lt.s32.totalorder %v1062_v15, 0  ;;  %v127_v5 = vsel %vm125_vm0, %v115_v39, 2102212464  ;;  %v132_v54 = vsel %vm124_vm5, %v115_v39, %v131_v56  ;;  %v135_v27 = vsel %vm125_vm0, %v121_v22, 1326507024 }
 0x10f   :  { %v681_v45 = vsel %vm1063_vm4, 0, %v1062_v15  ;;  %v1682_v57 = vsub.s32 %v254_v40, %v257_v26  ;;  %v134_v42 = vsel %vm122_vm1, %v112_v33, %v115_v39  ;;  %v1687_v14 = vsel %vm1059_vm15, 0, %v1058_v41 }
 0x110   :  { %v682_v61 = vsub.s32 32, %v681_v45  ;;  %v686_v31 = vsub.s32 4294967266, %v681_v45  ;;  %v133_v4 = vsel %vm123_vm2, %v130_v59, %v132_v54  ;;  %v136_v53 = vsel %vm124_vm5, %v118_v55, %v135_v27 }
 0x111   :  { %v138_v52 = vshll.u32 %v98_v34, 8  ;;  %v260_v7 = vsub.s32 0, %v1682_v57  ;;  %v126_v40 = vsel %vm122_vm1, %v106_v21, %v109_v38  ;;  %v128_v48 = vsel %vm124_vm5, %v112_v33, %v127_v5 }
 0x112   :  { %v684_v30 = vshrl.u32 %v666_v63, %v682_v61  ;;  %v687_v1 = vadd.s32 127, %v686_v31  ;;  %v137_v41 = vsel %vm123_vm2, %v134_v42, %v136_v53  ;;  %v791_v22 = vadd.s32 127, %v790_v19 }
 0x113   :  { %v1700_v29 = vmul.u32.u64.low %v138_v52, %v133_v4  ;;  %v1701_v39 = vmul.u32.u64.high %v138_v52, %v133_v4, %v1700_v29  ;;  %v683_v55 = vshll.u32 %v1640_v12, %v681_v45  ;;  %v1045_v15 = vmin.u32 %v260_v7, %v1682_v57 }
 0x114   :  { %v688_v63 = vshll.u32 %v687_v1, 23  ;;  %v894_v34 = vsub.s32 4294967266, %v1645_v47  ;;  %v582_v38 = vsub.s32 4294967266, %v1687_v14  ;;  %v129_v5 = vsel %vm123_vm2, %v126_v40, %v128_v48 }
 0x115   :  { %v1708_v21 = vmul.u32.u64.low %v138_v52, %v137_v41  ;;  %v1709_v56 = vmul.u32.u64.high %v138_v52, %v137_v41, %v1708_v21  ;;  %v685_v33 = vor.u32 %v684_v30, %v683_v55  ;;  %v262_v59 = vclz %v1045_v15 }
 0x116   :  { %v689_v26 = vor.u32 4788187, %v688_v63  ;;  %v1717_v12 = vmul.f32 %v380_v60, %v378_v16  ;;  %v487_v19 = vsel %vm404_vm3, %v486_v28, %v1603_v50  ;;  %v874_v45 = vadd.s32 %v1411_v58, %v1416_v62 }
 0x117   :  { %v148_v54 = vadd.s32 1, %v1701_v39  ;;  %v787_v10 = vshll.u32 %v1445_v17, %v1619_v36  ;;  %v2102_v8 = vsub.s32 32, %v1619_v36  ;;  %v1046_v60 = vadd.s32 4294967294, %v262_v59 }
 0x118   :  { %v690_v16 = vand.u32 2147483647, %v689_v26  ;;  %v792_v27 = vshll.u32 %v791_v22, 23  ;;  %v895_v61 = vadd.s32 127, %v894_v34  ;;  %v145_v31 = vmul.u32 %v138_v52, %v129_v5 }
 0x119   :  { %v788_v51 = vshrl.u32 %v1634_v44, %v2102_v8  ;;  %vm147_vm6 = vc.u32 %v1709_v56, %v1700_v29  ;;  %v583_v50 = vadd.s32 127, %v582_v38  ;;  %v692_v28 = vcvt.s32.f32 %v685_v33 }
 0x11a   :  { %vm1047_vm7 = vcmp.lt.s32.totalorder %v1046_v60, 0  ;;  %v149_v58 = vsel %vm147_vm6, %v148_v54, %v1701_v39  ;;  %v890_v62 = vsub.s32 32, %v1645_v47  ;;  %v578_v17 = vsub.s32 32, %v1687_v14 }
 0x11b   :  { %vm612_vm8 = vcmp.lt.s32.totalorder %v1404_v6, 0  ;;  %v265_v36 = vsel %vm1047_vm7, 0, %v1046_v60  ;;  %v150_v44 = vadd.s32 %v149_v58, %v145_v31  ;;  %v693_v42 = vmul.f32 %v692_v28, %v690_v16 }
 0x11c   :  { %v250_v4 = vadd.s32 %v1621_v18, %v1614_v0  ;;  %v266_v53 = vsub.s32 32, %v265_v36  ;;  %v270_v52 = vsub.s32 4294967266, %v265_v36  ;;  %v793_v30 = vor.u32 4788187, %v792_v27 }
 0x11d   :  { %v896_v1 = vshll.u32 %v895_v61, 23  ;;  %v562_v7 = vadd.s32 %v1486_v46, %v1495_v11  ;;  %vm196_vm9 = vcmp.lt.s32.totalorder %v1329_v23, 0  ;;  %v151_v40 = vadd.s32 536870912, %v150_v44 }
 0x11e   :  { %v584_v48 = vshll.u32 %v583_v50, 23  ;;  %v267_v41 = vshll.u32 %v1682_v57, %v265_v36  ;;  %v268_v39 = vshrl.u32 %v250_v4, %v266_v53  ;;  %v271_v22 = vadd.s32 127, %v270_v52 }
 0x11f   :  { %v891_v55 = vshll.u32 %v1483_v3, %v1645_v47  ;;  %v892_v63 = vshrl.u32 %v874_v45, %v890_v62  ;;  %v580_v0 = vshrl.u32 %v562_v7, %v578_v17  ;;  %v1746_v18 = vshrl.u32 %v151_v40, 30 }
 0x120   :  { %v694_v15 = vxor.u32 2147483648, %v693_v42  ;;  %v2103_v34 = vand.u32 2147483647, %v1329_v23  ;;  %v269_v11 = vor.u32 %v268_v39, %v267_v41  ;;  %v272_v38 = vshll.u32 %v271_v22, 23 }
 0x121   :  { %v2106_v57 = vand.u32 2147483647, %v1218_v25  ;;  %v897_v3 = vor.u32 4788187, %v896_v1  ;;  %v579_v47 = vshll.u32 %v1545_v32, %v1687_v14  ;;  %v153_v33 = vshll.u32 %v1746_v18, 30 }
 0x122   :  { %vm1750_vm10 = vcmp.le.f32.partialorder %v2103_v34, 0.7853982  ;;  %v789_v59 = vor.u32 %v788_v51, %v787_v10  ;;  %v585_v5 = vor.u32 4788187, %v584_v48  ;;  %v273_v45 = vor.u32 4788187, %v272_v38 }
 0x123   :  { %vm1756_vm11 = vcmp.le.f32.partialorder %v2106_v57, 0.7853982  ;;  %v280_v54 = vsub.s32 4, %v1668_v9  ;;  %v794_v8 = vand.u32 2147483647, %v793_v30  ;;  %v893_v16 = vor.u32 %v892_v63, %v891_v55 }
 0x124   :  { %v490_v26 = vsel %vm1756_vm11, %v1218_v25, %v487_v19  ;;  %v581_v60 = vor.u32 %v580_v0, %v579_v47  ;;  %v1767_v27 = vsub.s32 %v150_v44, %v153_v33  ;;  %v695_v61 = vsel %vm612_vm8, %v694_v15, %v693_v42 }
 0x125   :  { %v274_v32 = vand.u32 2147483647, %v273_v45  ;;  %v276_v14 = vcvt.s32.f32 %v269_v11  ;;  %1114 = vcosq.f32 %v490_v26  ;;  %v898_v31 = vand.u32 2147483647, %v897_v3 }
 0x126   :  { %v156_v50 = vsub.s32 0, %v1767_v27  ;;  %v488_v19 = vsub.s32 4, %v1322_v13  ;;  %1116 = vsinq.f32 %v490_v26  ;;  %v586_v10 = vand.u32 2147483647, %v585_v5 }
 0x127   :  { %v277_v51 = vmul.f32 %v276_v14, %v274_v32  ;;  %v281_v28 = vsel %vm196_vm9, %v280_v54, %v1668_v9  ;;  %v2109_v58 = vand.u32 2147483647, %v1404_v6  ;;  %vm300_vm13 = vcmp.lt.s32.totalorder %v1216_v24, 0 }
 0x128   :  { %v796_v17 = vcvt.s32.f32 %v789_v59  ;;  %v1041_v36 = vmin.u32 %v156_v50, %v1767_v27  ;;  %v382_v42 = vxor.u32 2147483648, %v1717_v12  ;;  %v900_v4 = vcvt.s32.f32 %v893_v16 }
 0x129   :  { %vm1778_vm12 = vcmp.le.f32.partialorder %v2109_v58, 0.7853982  ;;  %v588_v53 = vcvt.s32.f32 %v581_v60  ;;  %v278_v9 = vxor.u32 2147483648, %v277_v51  ;;  %v283_v30 = vsel %vm1750_vm10, 0, %v281_v28  ;;  %v2119_v28 = vld [vmem:[#allocation2_spill] sm:$0xff] }
 0x12a   :  { %v698_v44 = vsel %vm1778_vm12, %v1404_v6, %v695_v61  ;;  %v797_v52 = vmul.f32 %v796_v17, %v794_v8  ;;  %v158_v1 = vclz %v1041_v36  ;;  %v489_v7 = vsel %vm404_vm3, %v488_v19, %v1322_v13 }
 0x12b   :  { %v901_v40 = vmul.f32 %v900_v4, %v898_v31  ;;  %v589_v48 = vmul.f32 %v588_v53, %v586_v10  ;;  %v279_v41 = vsel %vm196_vm9, %v278_v9, %v277_v51  ;;  %1118 = vcosq.f32 %v698_v44  ;;  %v2118_v10 = vld [vmem:[#allocation4_spill] sm:$0xff] }
 0x12c   :  { %v282_v39 = vsel %vm1750_vm10, %v1329_v23, %v279_v41  ;;  %v1042_v22 = vadd.s32 4294967294, %v158_v1  ;;  %v696_v55 = vsub.s32 4, %v1609_v2  ;;  %1120 = vsinq.f32 %v698_v44 }
 0x12d   :  { %vm716_vm14 = vcmp.lt.s32.totalorder %v1232_v37, 0  ;;  %1122 = vcosq.f32 %v282_v39  ;;  %v287_v63 = vadd.s32 3, %v283_v30  ;;  %v491_v13 = vsel %vm1756_vm11, 0, %v489_v7 }
 0x12e   :  { %v383_v0 = vsel %vm300_vm13, %v382_v42, %v1717_v12  ;;  %v798_v15 = vxor.u32 2147483648, %v797_v52  ;;  %1124 = vsinq.f32 %v282_v39  ;;  %vm1043_vm15 = vcmp.lt.s32.totalorder %v1042_v22, 0 }
 0x12f   :  { %v902_v34 = vxor.u32 2147483648, %v901_v40  ;;  %v590_v46 = vxor.u32 2147483648, %v589_v48  ;;  %v146_v11 = vadd.s32 %v1700_v29, %v1709_v56  ;;  %v161_v38 = vsel %vm1043_vm15, 0, %v1042_v22 }
 0x130   :  { %v162_v57 = vsub.s32 32, %v161_v38  ;;  %v166_v3 = vsub.s32 4294967266, %v161_v38  ;;  %v495_v47 = vadd.s32 3, %v491_v13  ;;  %v697_v21 = vsel %vm612_vm8, %v696_v55, %v1609_v2 }
 0x131   :  { %vm820_vm0 = vcmp.lt.s32.totalorder %v1291_v35, 0  ;;  %vm508_vm1 = vcmp.lt.s32.totalorder %v1390_v43, 0  ;;  %v1812_v12 = vand.u32 3, %v287_v63  ;;  %v2112_v33 = vand.u32 2147483647, %v1216_v24 }
 0x132   :  { %v1115_v29 = vpop.eup %1114  ;;  %vm92_vm3 = vcmp.lt.s32.totalorder %v1325_v20, 0  ;;  %v163_v56 = vshll.u32 %v1767_v27, %v161_v38  ;;  %v164_v59 = vshrl.u32 %v146_v11, %v162_v57  ;;  %v167_v5 = vadd.s32 127, %v166_v3 }
 0x133   :  { %vm1816_vm2 = vcmp.le.f32.partialorder %v2112_v33, 0.7853982  ;;  %v1117_v45 = vpop.eup %1116  ;;  %v1827_v54 = vsel %vm716_vm14, %v798_v15, %v797_v52  ;;  %v903_v8 = vsel %vm820_vm0, %v902_v34, %v901_v40  ;;  %v384_v16 = vsub.s32 4, %v1302_v49 }
 0x134   :  { %v386_v2 = vsel %vm1816_vm2, %v1216_v24, %v383_v0  ;;  %v699_v60 = vsel %vm1778_vm12, 0, %v697_v21  ;;  %v591_v27 = vsel %vm508_vm1, %v590_v46, %v589_v48  ;;  %v165_v61 = vor.u32 %v164_v59, %v163_v56  ;;  %v2126_v21 = vld [vmem:[#allocation5_spill] sm:$0xff] }
 0x135   :  { %v168_v32 = vshll.u32 %v167_v5, 23  ;;  %v496_v14 = vand.u32 3, %v495_v47  ;;  %vm290_vm4 = vcmp.eq.s32.totalorder %v1812_v12, 0  ;;  %v502_v31 = vxor.u32 2147483648, %v1115_v29 }
 0x136   :  { %1126 = vcosq.f32 %v386_v2  ;;  %v2115_v50 = vand.u32 2147483647, %v1291_v35  ;;  %v904_v51 = vsub.s32 4, %v2118_v10  ;;  %vm289_vm6 = vcmp.lt.s32.totalorder %v1812_v12, 2 }
 0x137   :  { %vm927_vm7 = vcmp.eq.s32.totalorder %v2119_v28, 0  ;;  %v2120_v58 = vand.u32 2147483647, %v1325_v20  ;;  %v169_v17 = vor.u32 4788187, %v168_v32  ;;  %v499_v36 = vxor.u32 2147483648, %v1117_v45 }
 0x138   :  { %vm1839_vm5 = vcmp.le.f32.partialorder %v2115_v50, 0.7853982  ;;  %v703_v44 = vadd.s32 3, %v699_v60  ;;  %vm286_vm9 = vweird.f32 %v1329_v23  ;;  %vm293_vm10 = vcmp.eq.s32.totalorder %v1812_v12, 2  ;;  %v1119_v9 = vpop.eup %1118 }
 0x139   :  { %vm1848_vm8 = vcmp.le.f32.partialorder %v2120_v58, 0.7853982  ;;  %v906_v42 = vsel %vm1839_vm5, %v1291_v35, %v903_v8  ;;  %v176_v4 = vsub.s32 4, %v1746_v18  ;;  %v385_v53 = vsel %vm300_vm13, %v384_v16, %v1302_v49  ;;  %v1121_v1 = vpop.eup %1120 }
 0x13a   :  { %1128 = vsinq.f32 %v386_v2  ;;  %v170_v52 = vand.u32 2147483647, %v169_v17  ;;  %v172_v30 = vcvt.s32.f32 %v165_v61  ;;  %vm501_vm11 = vcmp.eq.s32.totalorder %v496_v14, 2  ;;  %v1123_v48 = vpop.eup %1122 }
 0x13b   :  { %1130 = vcosq.f32 %v906_v42  ;;  %vm498_vm12 = vcmp.eq.s32.totalorder %v496_v14, 0  ;;  %v503_v7 = vsel %vm501_vm11, %v502_v31, %v1117_v45  ;;  %v905_v40 = vsel %vm820_vm0, %v904_v51, %v2118_v10  ;;  %v1125_v63 = vpop.eup %1124 }
 0x13c   :  { %1132 = vsinq.f32 %v906_v42  ;;  %v173_v41 = vmul.f32 %v172_v30, %v170_v52  ;;  %v500_v39 = vsel %vm498_vm12, %v1115_v29, %v499_v36  ;;  %v704_v22 = vand.u32 3, %v703_v44  ;;  %v2130_v36 = vld [vmem:[#allocation3_spill] sm:$0xff] }
 0x13d   :  { %v2123_v49 = vand.u32 2147483647, %v1390_v43  ;;  %v294_v13 = vxor.u32 2147483648, %v1123_v48  ;;  %v177_v0 = vsel %vm92_vm3, %v176_v4, %v1746_v18  ;;  %vm497_vm15 = vcmp.lt.s32.totalorder %v496_v14, 2 }
 0x13e   :  { %v291_v34 = vxor.u32 2147483648, %v1125_v63  ;;  %v174_v46 = vxor.u32 2147483648, %v173_v41  ;;  %v710_v11 = vxor.u32 2147483648, %v1119_v9  ;;  %v907_v38 = vsel %vm1839_vm5, 0, %v905_v40 }
 0x13f   :  { %vm1866_vm13 = vcmp.le.f32.partialorder %v2123_v49, 0.7853982  ;;  %v295_v57 = vsel %vm293_vm10, %v294_v13, %v1125_v63  ;;  %v504_v3 = vsel %vm497_vm15, %v500_v39, %v503_v7  ;;  %v707_v47 = vxor.u32 2147483648, %v1121_v1 }
 0x140   :  { %v594_v15 = vsel %vm1866_vm13, %v1390_v43, %v591_v27  ;;  %v592_v33 = vsub.s32 4, %v2126_v21  ;;  %v292_v18 = vsel %vm290_vm4, %v1123_v48, %v291_v34  ;;  %v175_v29 = vsel %vm92_vm3, %v174_v46, %v173_v41 }
 0x141   :  { %vm709_vm0 = vcmp.eq.s32.totalorder %v704_v22, 2  ;;  %1134 = vcosq.f32 %v594_v15  ;;  %v296_v56 = vsel %vm289_vm6, %v292_v18, %v295_v57  ;;  %v178_v59 = vsel %vm1848_vm8, %v1325_v20, %v175_v29 }
 0x142   :  { %1136 = vsinq.f32 %v594_v15  ;;  %v911_v5 = vadd.s32 3, %v907_v38  ;;  %v297_v2 = vsel %vm286_vm9, nan, %v296_v56  ;;  %vm706_vm5 = vcmp.eq.s32.totalorder %v704_v22, 0 }
 0x143   :  { %1138 = vcosq.f32 %v178_v59  ;;  %v711_v45 = vsel %vm709_vm0, %v710_v11, %v1121_v1  ;;  %v932_v8 = vsel %vm927_vm7, %v1329_v23, %v297_v2  ;;  %v708_v16 = vsel %vm706_vm5, %v1119_v9, %v707_v47  ;;  %v1127_v27 = vpop.eup %1126 }
 0x144   :  { %1140 = vsinq.f32 %v178_v59  ;;  %v2127_v12 = vand.u32 2147483647, %v1232_v37  ;;  %971 = vxpose.xlu1.b32.start [1/4] (short) %v932_v8, 128  ;;  %vm494_vm4 = vweird.f32 %v1218_v25  ;;  %v387_v61 = vsel %vm1816_vm2, 0, %v385_v53 }
 0x145   :  { %v179_v32 = vsel %vm1848_vm8, 0, %v177_v0  ;;  %v505_v14 = vsel %vm494_vm4, nan, %v504_v3  ;;  %vm705_vm6 = vcmp.lt.s32.totalorder %v704_v22, 2  ;;  %v912_v31 = vand.u32 3, %v911_v5 }
 0x146   :  { %vm1897_vm3 = vcmp.le.f32.partialorder %v2127_v12, 0.7853982  ;;  %v712_v19 = vsel %vm705_vm6, %v708_v16, %v711_v45  ;;  %v391_v51 = vadd.s32 3, %v387_v61  ;;  %v593_v25 = vsel %vm508_vm1, %v592_v33, %v2126_v21 }
 0x147   :  { %v802_v23 = vsel %vm1897_vm3, %v1232_v37, %v1827_v54  ;;  %v1129_v50 = vpop.eup %1128  ;;  %v183_v58 = vadd.s32 3, %v179_v32  ;;  %vm702_vm2 = vweird.f32 %v1404_v6  ;;  %vm917_vm8 = vcmp.eq.s32.totalorder %v912_v31, 2 }
 0x148   :  { %v1131_v10 = vpop.eup %1130  ;;  %1142 = vcosq.f32 %v802_v23  ;;  %972 = vxpose.xlu1.b32.cont [2/4] (short) %v505_v14, 128  ;;  %v713_v62 = vsel %vm702_vm2, nan, %v712_v19  ;;  %v800_v44 = vsub.s32 4, %v2130_v36  ;;  %v595_v42 = vsel %vm1866_vm13, 0, %v593_v25 }
 0x149   :  { %v1133_v26 = vpop.eup %1132  ;;  %v918_v54 = vxor.u32 2147483648, %v1131_v10  ;;  %1144 = vsinq.f32 %v802_v23  ;;  %vm914_vm9 = vcmp.eq.s32.totalorder %v912_v31, 0  ;;  %v392_v53 = vand.u32 3, %v391_v51 }
 0x14a   :  { %v915_v17 = vxor.u32 2147483648, %v1133_v26  ;;  %vm913_vm1 = vcmp.lt.s32.totalorder %v912_v31, 2  ;;  %v184_v52 = vand.u32 3, %v183_v58  ;;  %v398_v6 = vxor.u32 2147483648, %v1127_v27 }
 0x14b   :  { %v919_v4 = vsel %vm917_vm8, %v918_v54, %v1133_v26  ;;  %v599_v7 = vadd.s32 3, %v595_v42  ;;  %v801_v40 = vsel %vm716_vm14, %v800_v44, %v2130_v36  ;;  %v395_v41 = vxor.u32 2147483648, %v1129_v50 }
 0x14c   :  { %v916_v9 = vsel %vm914_vm9, %v1131_v10, %v915_v17  ;;  %973 = vxpose.xlu1.b32.cont [3/4] (short) %v713_v62, 128  ;;  %vm910_vm10 = vweird.f32 %v1291_v35  ;;  %vm394_vm11 = vcmp.eq.s32.totalorder %v392_v53, 0  ;;  %vm186_vm12 = vcmp.eq.s32.totalorder %v184_v52, 0 }
 0x14d   :  { %v920_v30 = vsel %vm913_vm1, %v916_v9, %v919_v4  ;;  %vm397_vm13 = vcmp.eq.s32.totalorder %v392_v53, 2  ;;  %v803_v63 = vsel %vm1897_vm3, 0, %v801_v40  ;;  %vm189_vm15 = vcmp.eq.s32.totalorder %v184_v52, 2 }
 0x14e   :  { %v1135_v1 = vpop.eup %1134  ;;  %v921_v22 = vsel %vm910_vm10, nan, %v920_v30  ;;  %v399_v0 = vsel %vm397_vm13, %v398_v6, %v1129_v50  ;;  %v600_v15 = vand.u32 3, %v599_v7  ;;  %v396_v46 = vsel %vm394_vm11, %v1127_v27, %v395_v41 }
 0x14f   :  { %v1137_v48 = vpop.eup %1136  ;;  %v606_v38 = vxor.u32 2147483648, %v1135_v1  ;;  %vm185_vm14 = vcmp.lt.s32.totalorder %v184_v52, 2  ;;  %v807_v57 = vadd.s32 3, %v803_v63  ;;  %vm182_vm0 = vweird.f32 %v1325_v20 }
 0x150   :  { %v1139_v39 = vpop.eup %1138  ;;  %974 = vxpose.xlu1.b32.end [4/4] (short) %v921_v22, 128  ;;  %v603_v11 = vxor.u32 2147483648, %v1137_v48  ;;  %vm393_vm5 = vcmp.lt.s32.totalorder %v392_v53, 2  ;;  %vm602_vm3 = vcmp.eq.s32.totalorder %v600_v15, 0  ;;  %vm605_vm4 = vcmp.eq.s32.totalorder %v600_v15, 2 }
 0x151   :  { %v1141_v49 = vpop.eup %1140  ;;  %v190_v55 = vxor.u32 2147483648, %v1139_v39  ;;  %v400_v18 = vsel %vm393_vm5, %v396_v46, %v399_v0  ;;  %v607_v59 = vsel %vm605_vm4, %v606_v38, %v1137_v48  ;;  %vm390_vm6 = vweird.f32 %v1216_v24 }
 0x152   :  { %v187_v13 = vxor.u32 2147483648, %v1141_v49  ;;  %v604_v56 = vsel %vm602_vm3, %v1135_v1, %v603_v11  ;;  %v808_v5 = vand.u32 3, %v807_v57  ;;  %v401_v2 = vsel %vm390_vm6, nan, %v400_v18 }
 0x153   :  { %v191_v34 = vsel %vm189_vm15, %v190_v55, %v1141_v49  ;;  %vm601_vm2 = vcmp.lt.s32.totalorder %v600_v15, 2  ;;  %vm598_vm8 = vweird.f32 %v1390_v43  ;;  %vm806_vm10 = vweird.f32 %v1232_v37 }
 0x154   :  { %v188_v35 = vsel %vm186_vm12, %v1139_v39, %v187_v13  ;;  %v608_v16 = vsel %vm601_vm2, %v604_v56, %v607_v59  ;;  %vm810_vm9 = vcmp.eq.s32.totalorder %v808_v5, 0  ;;  %vm813_vm1 = vcmp.eq.s32.totalorder %v808_v5, 2 }
 0x155   :  { %v1143_v3 = vpop.eup %1142  ;;  %v192_v47 = vsel %vm185_vm14, %v188_v35, %v191_v34  ;;  %v609_v12 = vsel %vm598_vm8, nan, %v608_v16  ;;  %vm1003_vm11 = vcmask 261120  }
 0x156   :  { %v1145_v21 = vpop.eup %1144  ;;  %v193_v33 = vsel %vm182_vm0, nan, %v192_v47  ;;  %v814_v8 = vxor.u32 2147483648, %v1143_v3 }
 0x157   :  { %v931_v29 = vsel %vm927_vm7, %v1325_v20, %v193_v33  ;;  %v811_v45 = vxor.u32 2147483648, %v1145_v21  ;;  %vm809_vm7 = vcmp.lt.s32.totalorder %v808_v5, 2 }
 0x158   :  { %939 = vxpose.xlu0.b32.start [1/4] (short) %v931_v29, 128  ;;  %v815_v28 = vsel %vm813_vm1, %v814_v8, %v1145_v21 }
 0x159   :  { %v812_v60 = vsel %vm810_vm9, %v1143_v3, %v811_v45 }
 0x15a   :  { %v816_v20 = vsel %vm809_vm7, %v812_v60, %v815_v28 }
 0x15b   :  { %v817_v24 = vsel %vm806_vm10, nan, %v816_v20 }
 0x15c   :  { %940 = vxpose.xlu0.b32.cont [2/4] (short) %v401_v2, 128 }
 0x160   :  { %941 = vxpose.xlu0.b32.cont [3/4] (short) %v609_v12, 128 }
 0x164   :  { %942 = vxpose.xlu0.b32.end [4/4] (short) %v817_v24, 128 }
 0x1c0   :  { %v987_v27 = vpop.trf.xlu1 }
 0x1c1   :  { %1020 = vst.msk [vmem:[%s2061_s3 + $0x80] sm:$0xff] %vm1003_vm11, %v987_v27 }
 0x1c4   :  { %v988_v43 = vpop.trf.xlu1 }
 0x1c5   :  { %1021 = vst.msk [vmem:[%s2061_s3 + $0x88] sm:$0xff] %vm1003_vm11, %v988_v43 }
 0x1c8   :  { %v989_v61 = vpop.trf.xlu1 }
 0x1c9   :  { %1022 = vst.msk [vmem:[%s2061_s3 + $0x90] sm:$0xff] %vm1003_vm11, %v989_v61 }
 0x1cc   :  { %v990_v37 = vpop.trf.xlu1 }
 0x1cd   :  { %1023 = vst.msk [vmem:[%s2061_s3 + $0x98] sm:$0xff] %vm1003_vm11, %v990_v37 }
 0x1d0   :  { %v991_v23 = vpop.trf.xlu1 }
 0x1d1   :  { %1024 = vst.msk [vmem:[%s2061_s3 + $0xa0] sm:$0xff] %vm1003_vm11, %v991_v23 }
 0x1d4   :  { %v955_v32 = vpop.trf.xlu0  ;;  %v992_v14 = vpop.trf.xlu1 }
 0x1d5   :  { %1004 = vst.msk [vmem:[%s2061_s3] sm:$0xff] %vm1003_vm11, %v955_v32  ;;  %1025 = vst.msk [vmem:[%s2061_s3 + $0xa8] sm:$0xff] %vm1003_vm11, %v992_v14 }
 0x1d8   :  { %v956_v31 = vpop.trf.xlu0  ;;  %v993_v50 = vpop.trf.xlu1 }
 0x1d9   :  { %1005 = vst.msk [vmem:[%s2061_s3 + $0x8] sm:$0xff] %vm1003_vm11, %v956_v31  ;;  %1026 = vst.msk [vmem:[%s2061_s3 + $0xb0] sm:$0xff] %vm1003_vm11, %v993_v50 }
 0x1dc   :  { %v957_v19 = vpop.trf.xlu0  ;;  %v994_v10 = vpop.trf.xlu1 }
 0x1dd   :  { %1006 = vst.msk [vmem:[%s2061_s3 + $0x10] sm:$0xff] %vm1003_vm11, %v957_v19  ;;  %1027 = vst.msk [vmem:[%s2061_s3 + $0xb8] sm:$0xff] %vm1003_vm11, %v994_v10 }
 0x1e0   :  { %v958_v51 = vpop.trf.xlu0  ;;  %v995_v25 = vpop.trf.xlu1 }
 0x1e1   :  { %1007 = vst.msk [vmem:[%s2061_s3 + $0x18] sm:$0xff] %vm1003_vm11, %v958_v51  ;;  %1028 = vst.msk [vmem:[%s2061_s3 + $0xc0] sm:$0xff] %vm1003_vm11, %v995_v25 }
 0x1e4   :  { %v959_v26 = vpop.trf.xlu0  ;;  %v996_v58 = vpop.trf.xlu1 }
 0x1e5   :  { %1008 = vst.msk [vmem:[%s2061_s3 + $0x20] sm:$0xff] %vm1003_vm11, %v959_v26  ;;  %1029 = vst.msk [vmem:[%s2061_s3 + $0xc8] sm:$0xff] %vm1003_vm11, %v996_v58 }
 0x1e8   :  { %v960_v54 = vpop.trf.xlu0  ;;  %v997_v62 = vpop.trf.xlu1 }
 0x1e9   :  { %1009 = vst.msk [vmem:[%s2061_s3 + $0x28] sm:$0xff] %vm1003_vm11, %v960_v54  ;;  %1030 = vst.msk [vmem:[%s2061_s3 + $0xd0] sm:$0xff] %vm1003_vm11, %v997_v62 }
 0x1ec   :  { %v961_v17 = vpop.trf.xlu0  ;;  %v998_v36 = vpop.trf.xlu1 }
 0x1ed   :  { %1010 = vst.msk [vmem:[%s2061_s3 + $0x30] sm:$0xff] %vm1003_vm11, %v961_v17  ;;  %1031 = vst.msk [vmem:[%s2061_s3 + $0xd8] sm:$0xff] %vm1003_vm11, %v998_v36 }
 0x1f0   :  { %v962_v44 = vpop.trf.xlu0  ;;  %v999_v42 = vpop.trf.xlu1 }
 0x1f1   :  { %1011 = vst.msk [vmem:[%s2061_s3 + $0x38] sm:$0xff] %vm1003_vm11, %v962_v44  ;;  %1032 = vst.msk [vmem:[%s2061_s3 + $0xe0] sm:$0xff] %vm1003_vm11, %v999_v42 }
 0x1f4   :  { %v963_v4 = vpop.trf.xlu0  ;;  %v1000_v53 = vpop.trf.xlu1 }
 0x1f5   :  { %1012 = vst.msk [vmem:[%s2061_s3 + $0x40] sm:$0xff] %vm1003_vm11, %v963_v4  ;;  %1033 = vst.msk [vmem:[%s2061_s3 + $0xe8] sm:$0xff] %vm1003_vm11, %v1000_v53 }
 0x1f8   :  { %v964_v9 = vpop.trf.xlu0  ;;  %v1001_v52 = vpop.trf.xlu1 }
 0x1f9   :  { %1013 = vst.msk [vmem:[%s2061_s3 + $0x48] sm:$0xff] %vm1003_vm11, %v964_v9  ;;  %1034 = vst.msk [vmem:[%s2061_s3 + $0xf0] sm:$0xff] %vm1003_vm11, %v1001_v52 }
 0x1fc   :  { %v965_v30 = vpop.trf.xlu0  ;;  %v1002_v1 = vpop.trf.xlu1 }
 0x1fd   :  { %1014 = vst.msk [vmem:[%s2061_s3 + $0x50] sm:$0xff] %vm1003_vm11, %v965_v30  ;;  %1035 = vst.msk [vmem:[%s2061_s3 + $0xf8] sm:$0xff] %vm1003_vm11, %v1002_v1 }
 0x200   :  { %v966_v6 = vpop.trf.xlu0 }
 0x201   :  { %1015 = vst.msk [vmem:[%s2061_s3 + $0x58] sm:$0xff] %vm1003_vm11, %v966_v6 }
 0x204   :  { %v967_v7 = vpop.trf.xlu0 }
 0x205   :  { %1016 = vst.msk [vmem:[%s2061_s3 + $0x60] sm:$0xff] %vm1003_vm11, %v967_v7 }
 0x208   :  { %v968_v40 = vpop.trf.xlu0 }
 0x209   :  { %1017 = vst.msk [vmem:[%s2061_s3 + $0x68] sm:$0xff] %vm1003_vm11, %v968_v40 }
 0x20c   :  { %v969_v48 = vpop.trf.xlu0 }
 0x20d   :  { %1018 = vst.msk [vmem:[%s2061_s3 + $0x70] sm:$0xff] %vm1003_vm11, %v969_v48 }
 0x210   :  { %v970_v41 = vpop.trf.xlu0 }
 0x211   :  { %1019 = vst.msk [vmem:[%s2061_s3 + $0x78] sm:$0xff] %vm1003_vm11, %v970_v41 }

// kernel: tpu_custom_call.1
= control target key start
LH: loop header
LB: loop body
LE: loop exit
PB: predicated region body
PF: predicated region fallthrough
CT: control target
= control target key end

     0   :  { %v1102_v2 = vmov 0   ;;  %s1793_s0 = inlined_call_operand.vmem [shape: f32[1,256], index: 0, kind: input, shape index: {}]   ;;  %s1794_s1 = inlined_call_operand.vmem [shape: f32[32,1], index: 1, kind: input, shape index: {}]   ;;  %s1795_s2 = inlined_call_operand.vmem [shape: f32[32,1], index: 2, kind: input, shape index: {}]   ;;  %s1796_s3 = inlined_call_operand.hbm [shape: f32[32,256], index: 3, kind: output, shape index: {}]  }
   0x1   :  { %v18_v0 = vld [vmem:[%s1794_s1 + $0x10] sm:$0xff]  ;;  %v16_v1 = vld [vmem:[%s1794_s1] sm:$0xff]  ;;  %1047 = vset.pattern.permute.xlu1 %v1102_v2  ;;  %1046 = vset.pattern.permute.xlu0 %v1102_v2  ;;  %v19_v3 = vld [vmem:[%s1794_s1 + $0x18] sm:$0xff] }
   0x2   :  { %36 = vperm.xlu1 %1047, %v18_v0   ;;  %26 = vperm.xlu0 %1046, %v16_v1   ;;  %v17_v4 = vld [vmem:[%s1794_s1 + $0x8] sm:$0xff] }
   0x3   :  { %8 = vsyncpa [#allocation3], 0  ;;  %v21_v5 = vld [vmem:[%s1795_s2 + $0x8] sm:$0xff]  ;;  %v20_v6 = vld [vmem:[%s1795_s2] sm:$0xff]  ;;  %v45_v9 = vlaneseq  ;;  %v1103_v61 = vmov 683565275  }
   0x4   :  { %v23_v7 = vld [vmem:[%s1795_s2 + $0x18] sm:$0xff]  ;;  %v22_v8 = vld [vmem:[%s1795_s2 + $0x10] sm:$0xff]  ;;  %v15_v13 = vld [vmem:[%s1793_s0] sm:$0x3]  ;;  %v1104_v1 = vmov 2475754826  }
   0x5   :  { %v1158_v10 = vshrl.u32 %v45_v9, 7  ;;  %s1110_s0 = smov [#allocation2]  }
   0x6   :  { %41 = vperm.xlu1 %1047, %v19_v3   ;;  %31 = vperm.xlu0 %1046, %v17_v4   ;;  %v1105_v3 = vmov 2131351028   ;;  %s960_s2 = sshll.u32 %s1110_s0, 4  ;;  %s961_s2 = int_to_ptr.vmem [resolvable:$true] %s960_s2 }
   0x7   :  { %v47_v11 = vsub.s32 0, %v1158_v10  ;;  %v51_v12 = vsub.s32 1, %v1158_v10  ;;  %s1080_s29 = scalar_lea.vmem %s961_s2, 1024  ;;  %p1085_p1 = scmp.lt.s32.totalorder %s961_s2, %s961_s2 }
   0x8   :  { %p1081_p0 = scmp.ne.s32.totalorder %s961_s2, %s1080_s29  ;;  %p1086_p2 = scmp.lt.s32.totalorder %s1080_s29, %s1080_s29 }
   0x9   :  { %v48_v14 = vrot.slane %v15_v13, %v47_v11  ;;  %v52_v15 = vrot.slane %v15_v13, %v51_v12 }
   0xa   :  { %70 = vperm.xlu1 %1047, %v21_v5   ;;  %65 = vperm.xlu0 %1046, %v20_v6   ;;  %v1106_v5 = vmov 2102212464   ;;  %p1087_p3 = por %p1086_p2, %p1085_p1 }
   0xc   :  { %p1088_p4 = pnand %p1087_p3, %p1081_p0 }
   0xe   :  { %80 = vperm.xlu1 %1047, %v23_v7   ;;  %75 = vperm.xlu0 %1046, %v22_v8   ;;  %v1107_v7 = vmov 920167782  }
  0x7d   :  { %v37_v16 = vpop.permute.xlu1 %36  ;;  %v27_v17 = vpop.permute.xlu0 %26 }
  0x7e   :  { %v1165_v18 = vmul.f32 %v48_v14, %v37_v16  ;;  %v1167_v19 = vmul.f32 %v52_v15, %v37_v16  ;;  %v55_v26 = vmul.f32 %v48_v14, %v27_v17  ;;  %v56_v50 = vmul.f32 %v52_v15, %v27_v17 }
  0x7f   :  { %v1108_v16 = vmov 1326507024  }
  0x81   :  { %v42_v20 = vpop.permute.xlu1 %41  ;;  %v32_v21 = vpop.permute.xlu0 %31 }
  0x82   :  { %v1169_v22 = vmul.f32 %v48_v14, %v42_v20  ;;  %v1171_v23 = vmul.f32 %v52_v15, %v42_v20  ;;  %v57_v24 = vmul.f32 %v48_v14, %v32_v21  ;;  %v58_v25 = vmul.f32 %v52_v15, %v32_v21 }
  0x85   :  { %v71_v27 = vpop.permute.xlu1 %70  ;;  %v66_v28 = vpop.permute.xlu0 %65 }
  0x86   :  { %v1173_v29 = vadd.f32 %v71_v27, %v57_v24  ;;  %v1175_v30 = vadd.f32 %v71_v27, %v58_v25  ;;  %v1177_v31 = vadd.f32 %v66_v28, %v55_v26  ;;  %v1189_v55 = vadd.f32 %v66_v28, %v56_v50 }
  0x88   :  { %v299_v32 = vand.u32 2147483647, %v1173_v29  ;;  %v302_v33 = vand.u32 2139095040, %v1173_v29  ;;  %v403_v34 = vand.u32 2147483647, %v1175_v30  ;;  %v406_v35 = vand.u32 2139095040, %v1175_v30 }
  0x89   :  { %v94_v40 = vand.u32 2139095040, %v1177_v31  ;;  %v91_v48 = vand.u32 2147483647, %v1177_v31  ;;  %vm301_vm13 = vcmp.lt.s32.totalorder %v1173_v29, 0 }
  0x8a   :  { %v303_v36 = vshrl.u32 %v302_v33, 23  ;;  %v306_v37 = vand.u32 8388607, %v299_v32  ;;  %v407_v38 = vshrl.u32 %v406_v35, 23  ;;  %v410_v39 = vand.u32 8388607, %v403_v34 }
  0x8b   :  { %v95_v43 = vshrl.u32 %v94_v40, 23  ;;  %v1197_v58 = vand.u32 8388607, %v91_v48  ;;  %vm1301_vm14 = vcmp.le.f32.partialorder %v299_v32, 0.7853982 }
  0x8c   :  { %v979_v41 = vadd.s32 4294967169, %v303_v36  ;;  %v983_v42 = vadd.s32 4294967169, %v407_v38  ;;  %v307_v44 = vor.u32 8388608, %v306_v37  ;;  %v411_v46 = vor.u32 8388608, %v410_v39 }
  0x8d   :  { %v971_v49 = vadd.s32 4294967169, %v95_v43 }
  0x8e   :  { %v309_v45 = vadd.s32 1, %v979_v41  ;;  %v413_v47 = vadd.s32 1, %v983_v42  ;;  %v1191_v56 = vshll.u32 %v307_v44, 8  ;;  %v1193_v57 = vshll.u32 %v411_v46, 8 }
  0x8f   :  { %v1199_v59 = vadd.s32 1, %v971_v49 }
  0x90   :  { %vm310_vm0 = vcmp.gt.s32.totalorder %v309_v45, 0  ;;  %vm414_vm1 = vcmp.gt.s32.totalorder %v413_v47, 0 }
  0x91   :  { %v311_v51 = vsel %vm310_vm0, %v309_v45, 0  ;;  %v415_v54 = vsel %vm414_vm1, %v413_v47, 0  ;;  %vm102_vm6 = vcmp.gt.s32.totalorder %v1199_v59, 0 }
  0x92   :  { %v312_v52 = vshrl.u32 %v311_v51, 5  ;;  %v313_v53 = vand.u32 31, %v311_v51  ;;  %v1202_v63 = vshrl.u32 %v415_v54, 5  ;;  %v417_v0 = vand.u32 31, %v415_v54 }
  0x94   :  { %v314_v60 = vsub.s32 32, %v313_v53  ;;  %v316_v62 = vshll.u32 %v1103_v61, %v313_v53  ;;  %v319_v2 = vshll.u32 %v1104_v1, %v313_v53  ;;  %v322_v4 = vshll.u32 %v1105_v3, %v313_v53 }
  0x95   :  { %v325_v6 = vshll.u32 %v1106_v5, %v313_v53  ;;  %v328_v8 = vshll.u32 %v1107_v7, %v313_v53  ;;  %vm331_vm2 = vcmp.lt.s32.totalorder %v312_v52, 1  ;;  %vm332_vm3 = vcmp.lt.s32.totalorder %v312_v52, 2 }
  0x96   :  { %v317_v11 = vshrl.u32 %v1104_v1, %v314_v60  ;;  %v320_v12 = vshrl.u32 %v1105_v3, %v314_v60  ;;  %v323_v13 = vshrl.u32 %v1106_v5, %v314_v60  ;;  %v315_v14 = vshrl.u32 %v1103_v61, %v314_v60 }
  0x97   :  { %v326_v15 = vshrl.u32 %v1107_v7, %v314_v60  ;;  %v329_v17 = vshrl.u32 %v1108_v16, %v314_v60  ;;  %v418_v25 = vsub.s32 32, %v417_v0  ;;  %vm333_vm4 = vcmp.lt.s32.totalorder %v312_v52, 3 }
  0x98   :  { %v318_v20 = vor.u32 %v317_v11, %v316_v62  ;;  %v321_v21 = vor.u32 %v320_v12, %v319_v2  ;;  %v324_v24 = vor.u32 %v323_v13, %v322_v4  ;;  %vm334_vm5 = vcmp.lt.s32.totalorder %v312_v52, 4 }
  0x99   :  { %v327_v26 = vor.u32 %v326_v15, %v325_v6  ;;  %v330_v27 = vor.u32 %v329_v17, %v328_v8  ;;  %v420_v40 = vshll.u32 %v1103_v61, %v417_v0  ;;  %v421_v43 = vshrl.u32 %v1104_v1, %v418_v25 }
  0x9a   :  { %v335_v28 = vsel %vm331_vm2, %v315_v14, %v318_v20  ;;  %v336_v33 = vsel %vm334_vm5, %v324_v24, 2102212464  ;;  %v339_v35 = vsel %vm331_vm2, %v318_v20, %v321_v21  ;;  %v343_v36 = vsel %vm331_vm2, %v321_v21, %v324_v24 }
  0x9b   :  { %v337_v37 = vsel %vm333_vm4, %v321_v21, %v336_v33  ;;  %v340_v38 = vsel %vm334_vm5, %v327_v26, 920167782  ;;  %v344_v39 = vsel %vm334_vm5, %v330_v27, 1326507024  ;;  %v423_v44 = vshll.u32 %v1104_v1, %v417_v0 }
  0x9c   :  { %v341_v41 = vsel %vm333_vm4, %v324_v24, %v340_v38  ;;  %v345_v42 = vsel %vm333_vm4, %v327_v26, %v344_v39  ;;  %v338_v45 = vsel %vm332_vm3, %v335_v28, %v337_v37  ;;  %v424_v49 = vshrl.u32 %v1105_v3, %v418_v25 }
  0x9d   :  { %v342_v46 = vsel %vm332_vm3, %v339_v35, %v341_v41  ;;  %v346_v47 = vsel %vm332_vm3, %v343_v36, %v345_v42  ;;  %v422_v60 = vor.u32 %v421_v43, %v420_v40  ;;  %v426_v2 = vshll.u32 %v1105_v3, %v417_v0 }
  0x9e   :  { %v1226_v50 = vmul.u32.u64.low %v1191_v56, %v346_v47  ;;  %v1227_v51 = vmul.u32.u64.high %v1191_v56, %v346_v47, %v1226_v50  ;;  %v1230_v53 = vmul.u32.u64.low %v1191_v56, %v342_v46  ;;  %v1231_v54 = vmul.u32.u64.high %v1191_v56, %v342_v46, %v1230_v53 }
  0x9f   :  { %v425_v62 = vor.u32 %v424_v49, %v423_v44  ;;  %v427_v4 = vshrl.u32 %v1106_v5, %v418_v25  ;;  %v419_v6 = vshrl.u32 %v1103_v61, %v418_v25  ;;  %v429_v52 = vshll.u32 %v1106_v5, %v417_v0 }
  0xa0   :  { %v430_v8 = vshrl.u32 %v1107_v7, %v418_v25  ;;  %v433_v11 = vshrl.u32 %v1108_v16, %v418_v25  ;;  %v354_v12 = vmul.u32 %v1191_v56, %v338_v45  ;;  %v432_v14 = vshll.u32 %v1107_v7, %v417_v0 }
  0xa1   :  { %v428_v13 = vor.u32 %v427_v4, %v426_v2  ;;  %vm435_vm7 = vcmp.lt.s32.totalorder %v1202_v63, 1  ;;  %vm356_vm8 = vc.u32 %v1227_v51, %v1230_v53  ;;  %v357_v15 = vadd.s32 1, %v1231_v54 }
  0xa2   :  { %v431_v17 = vor.u32 %v430_v8, %v429_v52  ;;  %vm436_vm9 = vcmp.lt.s32.totalorder %v1202_v63, 2  ;;  %v434_v20 = vor.u32 %v433_v11, %v432_v14  ;;  %vm437_vm10 = vcmp.lt.s32.totalorder %v1202_v63, 3 }
  0xa3   :  { %vm438_vm11 = vcmp.lt.s32.totalorder %v1202_v63, 4  ;;  %v443_v21 = vsel %vm435_vm7, %v422_v60, %v425_v62  ;;  %v358_v56 = vsel %vm356_vm8, %v357_v15, %v1231_v54  ;;  %v447_v0 = vsel %vm435_vm7, %v425_v62, %v428_v13 }
  0xa4   :  { %v440_v24 = vsel %vm438_vm11, %v428_v13, 2102212464  ;;  %v444_v25 = vsel %vm438_vm11, %v431_v17, 920167782  ;;  %v359_v26 = vadd.s32 %v358_v56, %v354_v12  ;;  %v439_v27 = vsel %vm435_vm7, %v419_v6, %v422_v60 }
  0xa5   :  { %v445_v28 = vsel %vm437_vm10, %v428_v13, %v444_v25  ;;  %v448_v33 = vsel %vm438_vm11, %v434_v20, 1326507024  ;;  %v441_v35 = vsel %vm437_vm10, %v425_v62, %v440_v24  ;;  %v103_v38 = vsel %vm102_vm6, %v1199_v59, 0 }
  0xa6   :  { %v446_v36 = vsel %vm436_vm9, %v443_v21, %v445_v28  ;;  %v449_v37 = vsel %vm437_vm10, %v431_v17, %v448_v33  ;;  %v360_v39 = vadd.s32 536870912, %v359_v26  ;;  %v198_v45 = vand.u32 2139095040, %v1189_v55 }
  0xa7   :  { %v450_v40 = vsel %vm436_vm9, %v447_v0, %v449_v37  ;;  %v1256_v41 = vmul.u32.u64.low %v1193_v57, %v446_v36  ;;  %v1257_v42 = vmul.u32.u64.high %v1193_v57, %v446_v36, %v1256_v41  ;;  %v442_v47 = vsel %vm436_vm9, %v439_v27, %v441_v35 }
  0xa8   :  { %v1261_v43 = vmul.u32.u64.low %v1193_v57, %v450_v40  ;;  %v1262_v44 = vmul.u32.u64.high %v1193_v57, %v450_v40, %v1261_v43  ;;  %v361_v46 = vshrl.u32 %v360_v39, 30  ;;  %v105_v59 = vand.u32 31, %v103_v38 }
  0xa9   :  { %v195_v49 = vand.u32 2147483647, %v1189_v55  ;;  %v99_v50 = vor.u32 8388608, %v1197_v58  ;;  %v461_v60 = vadd.s32 1, %v1257_v42  ;;  %v1109_v2 = vmov 1966171168  }
  0xaa   :  { %v362_v54 = vshll.u32 %v361_v46, 30  ;;  %v106_v62 = vsub.s32 32, %v105_v59  ;;  %v1270_v4 = vunpack.c.l.s4 %v1109_v2  ;;  %v458_v6 = vmul.u32 %v1193_v57, %v442_v47 }
  0xab   :  { %vm460_vm12 = vc.u32 %v1262_v44, %v1256_v41  ;;  %v199_v52 = vshrl.u32 %v198_v45, 23  ;;  %v1281_v58 = vand.u32 8388607, %v195_v49  ;;  %v355_v11 = vadd.s32 %v1230_v53, %v1227_v51 }
  0xac   :  { %v1276_v63 = vsub.s32 %v359_v26, %v362_v54  ;;  %v462_v8 = vsel %vm460_vm12, %v461_v60, %v1257_v42  ;;  %v109_v13 = vshrl.u32 %v1104_v1, %v106_v62  ;;  %v1285_v57 = vshll.u32 %v99_v50, 8 }
  0xad   :  { %v463_v12 = vadd.s32 %v462_v8, %v458_v6  ;;  %v1288_v15 = vshrl.u32 %v103_v38, 5  ;;  %v112_v17 = vshrl.u32 %v1105_v3, %v106_v62  ;;  %v115_v20 = vshrl.u32 %v1106_v5, %v106_v62 }
  0xae   :  { %v365_v14 = vsub.s32 0, %v1276_v63  ;;  %v385_v21 = vsub.s32 4, %v361_v46  ;;  %v108_v24 = vshll.u32 %v1103_v61, %v105_v59  ;;  %v975_v25 = vadd.s32 4294967169, %v199_v52 }
  0xaf   :  { %v464_v56 = vadd.s32 536870912, %v463_v12  ;;  %v111_v53 = vshll.u32 %v1104_v1, %v105_v59  ;;  %v114_v0 = vshll.u32 %v1105_v3, %v105_v59  ;;  %v118_v26 = vshrl.u32 %v1107_v7, %v106_v62 }
  0xb0   :  { %v980_v51 = vmin.u32 %v365_v14, %v1276_v63  ;;  %v110_v28 = vor.u32 %v109_v13, %v108_v24  ;;  %v117_v33 = vshll.u32 %v1106_v5, %v105_v59  ;;  %v121_v35 = vshrl.u32 %v1108_v16, %v106_v62 }
  0xb1   :  { %v465_v27 = vshrl.u32 %v464_v56, 30  ;;  %v113_v38 = vor.u32 %v112_v17, %v111_v53  ;;  %v116_v39 = vor.u32 %v115_v20, %v114_v0  ;;  %v120_v40 = vshll.u32 %v1107_v7, %v105_v59 }
  0xb2   :  { %v367_v37 = vclz %v980_v51  ;;  %v119_v43 = vor.u32 %v118_v26, %v117_v33  ;;  %vm123_vm15 = vcmp.lt.s32.totalorder %v1288_v15, 1  ;;  %v203_v45 = vor.u32 8388608, %v1281_v58 }
  0xb3   :  { %v466_v42 = vshll.u32 %v465_v27, 30  ;;  %v122_v50 = vor.u32 %v121_v35, %v120_v40  ;;  %vm124_vm0 = vcmp.lt.s32.totalorder %v1288_v15, 2  ;;  %vm126_vm1 = vcmp.lt.s32.totalorder %v1288_v15, 4 }
  0xb4   :  { %v981_v47 = vadd.s32 4294967294, %v367_v37  ;;  %v386_v32 = vsel %vm301_vm13, %v385_v21, %v361_v46  ;;  %vm405_vm2 = vcmp.lt.s32.totalorder %v1175_v30, 0  ;;  %vm125_vm3 = vcmp.lt.s32.totalorder %v1288_v15, 3 }
  0xb5   :  { %v1313_v54 = vsub.s32 %v463_v12, %v466_v42  ;;  %v132_v59 = vsel %vm126_vm1, %v119_v43, 920167782  ;;  %v107_v60 = vshrl.u32 %v1103_v61, %v106_v62  ;;  %v131_v2 = vsel %vm123_vm15, %v110_v28, %v113_v38 }
  0xb6   :  { %vm982_vm4 = vcmp.lt.s32.totalorder %v981_v47, 0  ;;  %v133_v6 = vsel %vm125_vm3, %v116_v39, %v132_v59  ;;  %v489_v8 = vsub.s32 4, %v465_v27  ;;  %v135_v12 = vsel %vm123_vm15, %v113_v38, %v116_v39 }
  0xb7   :  { %v370_v52 = vsel %vm982_vm4, 0, %v981_v47  ;;  %v469_v46 = vsub.s32 0, %v1313_v54  ;;  %vm1328_vm5 = vcmp.le.f32.partialorder %v403_v34, 0.7853982  ;;  %v128_v62 = vsel %vm126_vm1, %v116_v39, 2102212464 }
  0xb8   :  { %v371_v13 = vsub.s32 32, %v370_v52  ;;  %v375_v14 = vsub.s32 4294967266, %v370_v52  ;;  %v136_v20 = vsel %vm126_vm1, %v122_v50, 1326507024  ;;  %v372_v21 = vshll.u32 %v1276_v63, %v370_v52 }
  0xb9   :  { %v984_v56 = vmin.u32 %v469_v46, %v1313_v54  ;;  %v134_v24 = vsel %vm124_vm0, %v131_v2, %v133_v6  ;;  %v137_v51 = vsel %vm125_vm3, %v119_v43, %v136_v20  ;;  %v205_v26 = vadd.s32 1, %v975_v25 }
  0xba   :  { %v373_v34 = vshrl.u32 %v355_v11, %v371_v13  ;;  %v376_v53 = vadd.s32 127, %v375_v14  ;;  %v138_v0 = vsel %vm124_vm0, %v135_v12, %v137_v51  ;;  %v388_v33 = vsel %vm1301_vm14, 0, %v386_v32 }
  0xbb   :  { %v471_v35 = vclz %v984_v56  ;;  %v127_v63 = vsel %vm123_vm15, %v107_v60, %v110_v28  ;;  %v129_v37 = vsel %vm125_vm3, %v113_v38, %v128_v62  ;;  %vm206_vm6 = vcmp.gt.s32.totalorder %v205_v26, 0 }
  0xbc   :  { %v374_v39 = vor.u32 %v373_v34, %v372_v21  ;;  %v377_v40 = vshll.u32 %v376_v53, 23  ;;  %v1351_v42 = vmul.u32.u64.low %v1285_v57, %v138_v0  ;;  %v1352_v11 = vmul.u32.u64.high %v1285_v57, %v138_v0, %v1351_v42 }
  0xbd   :  { %v985_v43 = vadd.s32 4294967294, %v471_v35  ;;  %v1355_v47 = vmul.u32.u64.low %v1285_v57, %v134_v24  ;;  %v1356_v25 = vmul.u32.u64.high %v1285_v57, %v134_v24, %v1355_v47  ;;  %v459_v28 = vadd.s32 %v1256_v41, %v1262_v44 }
  0xbe   :  { %v378_v50 = vor.u32 4788187, %v377_v40  ;;  %v490_v38 = vsel %vm405_vm2, %v489_v8, %v465_v27  ;;  %v207_v32 = vsel %vm206_vm6, %v205_v26, 0  ;;  %v392_v59 = vadd.s32 3, %v388_v33 }
  0xbf   :  { %vm986_vm7 = vcmp.lt.s32.totalorder %v985_v43, 0  ;;  %v130_v60 = vsel %vm124_vm0, %v127_v63, %v129_v37  ;;  %v209_v2 = vand.u32 31, %v207_v32  ;;  %v381_v52 = vcvt.s32.f32 %v374_v39 }
  0xc0   :  { %v379_v6 = vand.u32 2147483647, %v378_v50  ;;  %v474_v46 = vsel %vm986_vm7, 0, %v985_v43  ;;  %vm148_vm8 = vc.u32 %v1352_v11, %v1355_v47  ;;  %v492_v41 = vsel %vm1328_vm5, 0, %v490_v38 }
  0xc1   :  { %v475_v12 = vsub.s32 32, %v474_v46  ;;  %v479_v13 = vsub.s32 4294967266, %v474_v46  ;;  %v149_v44 = vadd.s32 1, %v1356_v25  ;;  %v146_v8 = vmul.u32 %v1285_v57, %v130_v60 }
  0xc2   :  { %v382_v27 = vmul.f32 %v381_v52, %v379_v6  ;;  %v1371_v14 = vshrl.u32 %v207_v32, 5  ;;  %v210_v15 = vsub.s32 32, %v209_v2  ;;  %v476_v62 = vshll.u32 %v1313_v54, %v474_v46 }
  0xc3   :  { %v477_v20 = vshrl.u32 %v459_v28, %v475_v12  ;;  %v480_v21 = vadd.s32 127, %v479_v13  ;;  %v150_v56 = vsel %vm148_vm8, %v149_v44, %v1356_v25  ;;  %v212_v34 = vshll.u32 %v1103_v61, %v209_v2 }
  0xc4   :  { %v383_v24 = vxor.u32 2147483648, %v382_v27  ;;  %v151_v51 = vadd.s32 %v150_v56, %v146_v8  ;;  %v213_v53 = vshrl.u32 %v1104_v1, %v210_v15  ;;  %v215_v33 = vshll.u32 %v1104_v1, %v209_v2 }
  0xc5   :  { %v478_v0 = vor.u32 %v477_v20, %v476_v62  ;;  %v481_v26 = vshll.u32 %v480_v21, 23  ;;  %v216_v57 = vshrl.u32 %v1105_v3, %v210_v15  ;;  %v218_v63 = vshll.u32 %v1105_v3, %v209_v2 }
  0xc6   :  { %v384_v35 = vsel %vm301_vm13, %v383_v24, %v382_v27  ;;  %v152_v54 = vadd.s32 536870912, %v151_v51  ;;  %v219_v37 = vshrl.u32 %v1106_v5, %v210_v15  ;;  %v214_v42 = vor.u32 %v213_v53, %v212_v34 }
  0xc7   :  { %v387_v39 = vsel %vm1301_vm14, %v1173_v29, %v384_v35  ;;  %v482_v40 = vor.u32 4788187, %v481_v26  ;;  %v221_v43 = vshll.u32 %v1106_v5, %v209_v2  ;;  %v485_v25 = vcvt.s32.f32 %v478_v0 }
  0xc8   :  { %1048 = vcosq.f32 %v387_v39  ;;  %v1387_v50 = vshrl.u32 %v152_v54, 30  ;;  %v222_v28 = vshrl.u32 %v1107_v7, %v210_v15  ;;  %v217_v32 = vor.u32 %v216_v57, %v215_v33  ;;  %v81_v57 = vpop.permute.xlu1 %80 }
  0xc9   :  { %1050 = vsinq.f32 %v387_v39  ;;  %v483_v38 = vand.u32 2147483647, %v482_v40  ;;  %v225_v60 = vshrl.u32 %v1108_v16, %v210_v15  ;;  %v936_v6 = vunpack.c.0.s8 %v1270_v4 }
  0xca   :  { %v154_v36 = vshll.u32 %v1387_v50, 30  ;;  %v223_v52 = vor.u32 %v222_v28, %v221_v43  ;;  %v1393_v46 = vand.u32 3, %v392_v59  ;;  %v220_v13 = vor.u32 %v219_v37, %v218_v63 }
  0xcb   :  { %v486_v12 = vmul.f32 %v485_v25, %v483_v38  ;;  %v224_v44 = vshll.u32 %v1107_v7, %v209_v2  ;;  %v496_v27 = vadd.s32 3, %v492_v41  ;;  %vm227_vm9 = vcmp.lt.s32.totalorder %v1371_v14, 1 }
  0xcc   :  { %v1396_v8 = vsub.s32 %v151_v51, %v154_v36  ;;  %v1401_v62 = vshll.u32 %v203_v45, 8  ;;  %vm230_vm10 = vcmp.lt.s32.totalorder %v1371_v14, 4  ;;  %v235_v59 = vsel %vm227_vm9, %v214_v42, %v217_v32 }
  0xcd   :  { %v487_v20 = vxor.u32 2147483648, %v486_v12  ;;  %v226_v21 = vor.u32 %v225_v60, %v224_v44  ;;  %vm93_vm11 = vcmp.lt.s32.totalorder %v1177_v31, 0  ;;  %v211_v41 = vshrl.u32 %v1103_v61, %v210_v15 }
  0xce   :  { %v157_v2 = vsub.s32 0, %v1396_v8  ;;  %vm229_vm12 = vcmp.lt.s32.totalorder %v1371_v14, 3  ;;  %v236_v58 = vsel %vm230_vm10, %v223_v52, 920167782  ;;  %vm228_vm13 = vcmp.lt.s32.totalorder %v1371_v14, 2 }
  0xcf   :  { %v488_v45 = vsel %vm405_vm2, %v487_v20, %v486_v12  ;;  %v232_v56 = vsel %vm230_vm10, %v220_v13, 2102212464  ;;  %v237_v24 = vsel %vm229_vm12, %v220_v13, %v236_v58  ;;  %v239_v53 = vsel %vm227_vm9, %v217_v32, %v220_v13 }
  0xd0   :  { %v491_v15 = vsel %vm1328_vm5, %v1175_v30, %v488_v45  ;;  %v972_v51 = vmin.u32 %v157_v2, %v1396_v8  ;;  %v238_v34 = vsel %vm228_vm13, %v235_v59, %v237_v24  ;;  %v240_v0 = vsel %vm230_vm10, %v226_v21, 1326507024 }
  0xd1   :  { %1052 = vcosq.f32 %v491_v15  ;;  %v1430_v26 = vmul.u32.u64.low %v1401_v62, %v238_v34  ;;  %v1431_v33 = vmul.u32.u64.high %v1401_v62, %v238_v34, %v1430_v26  ;;  %vm391_vm14 = vweird.f32 %v1173_v29 }
  0xd2   :  { %1054 = vsinq.f32 %v491_v15  ;;  %v159_v17 = vclz %v972_v51  ;;  %v231_v35 = vsel %vm227_vm9, %v211_v41, %v214_v42  ;;  %v233_v54 = vsel %vm229_vm12, %v217_v32, %v232_v56 }
  0xd3   :  { %vm394_vm15 = vcmp.lt.s32.totalorder %v1393_v46, 2  ;;  %vm395_vm0 = vcmp.eq.s32.totalorder %v1393_v46, 0  ;;  %v177_v63 = vsub.s32 4, %v1387_v50  ;;  %v241_v37 = vsel %vm229_vm12, %v223_v52, %v240_v0 }
  0xd4   :  { %vm398_vm1 = vcmp.eq.s32.totalorder %v1393_v46, 2  ;;  %v973_v39 = vadd.s32 4294967294, %v159_v17  ;;  %v242_v40 = vsel %vm228_vm13, %v239_v53, %v241_v37  ;;  %v1448_v42 = vadd.f32 %v81_v57, %v1169_v22 }
  0xd5   :  { %v1049_v43 = vpop.eup %1048  ;;  %v497_v25 = vand.u32 3, %v496_v27  ;;  %v234_v28 = vsel %vm228_vm13, %v231_v35, %v233_v54  ;;  %v1453_v38 = vmul.u32.u64.low %v1401_v62, %v242_v40  ;;  %v1454_v32 = vmul.u32.u64.high %v1401_v62, %v242_v40, %v1453_v38 }
  0xd6   :  { %v1051_v60 = vpop.eup %1050  ;;  %v399_v36 = vxor.u32 2147483648, %v1049_v43  ;;  %v147_v52 = vadd.s32 %v1355_v47, %v1352_v11  ;;  %vm974_vm2 = vcmp.lt.s32.totalorder %v973_v39, 0  ;;  %v253_v12 = vadd.s32 1, %v1431_v33 }
  0xd7   :  { %v396_v13 = vxor.u32 2147483648, %v1051_v60  ;;  %v162_v22 = vsel %vm974_vm2, 0, %v973_v39  ;;  %v178_v44 = vsel %vm93_vm11, %v177_v63, %v1387_v50  ;;  %v718_v14 = vand.u32 2139095040, %v1448_v42 }
  0xd8   :  { %v400_v27 = vsel %vm398_vm1, %v399_v36, %v1051_v60  ;;  %v163_v20 = vsub.s32 32, %v162_v22  ;;  %v167_v21 = vsub.s32 4294967266, %v162_v22  ;;  %v250_v59 = vmul.u32 %v1401_v62, %v234_v28 }
  0xd9   :  { %v397_v11 = vsel %vm395_vm0, %v1049_v43, %v396_v13  ;;  %v164_v47 = vshll.u32 %v1396_v8, %v162_v22  ;;  %vm252_vm3 = vc.u32 %v1454_v32, %v1430_v26  ;;  %v715_v2 = vand.u32 2147483647, %v1448_v42 }
  0xda   :  { %v401_v50 = vsel %vm394_vm15, %v397_v11, %v400_v27  ;;  %v165_v41 = vshrl.u32 %v147_v52, %v163_v20  ;;  %v168_v58 = vadd.s32 127, %v167_v21  ;;  %v254_v45 = vsel %vm252_vm3, %v253_v12, %v1431_v33 }
  0xdb   :  { %v402_v62 = vsel %vm391_vm14, nan, %v401_v50  ;;  %v255_v56 = vadd.s32 %v254_v45, %v250_v59  ;;  %v1478_v24 = vadd.f32 %v81_v57, %v1171_v23  ;;  %v719_v8 = vshrl.u32 %v718_v14, 23 }
  0xdc   :  { %v1483_v15 = vsub.s32 %v936_v6, %v1158_v10  ;;  %925 = vst [vmem:[#allocation2 + $0x10] sm:$0xff] %v402_v62  ;;  %vm1487_vm4 = vcmp.le.f32.partialorder %v91_v48, 0.7853982  ;;  %v166_v51 = vor.u32 %v165_v41, %v164_v47  ;;  %v169_v29 = vshll.u32 %v168_v58, 23 }
  0xdd   :  { %vm495_vm5 = vweird.f32 %v1175_v30  ;;  %v180_v23 = vsel %vm1487_vm4, 0, %v178_v44  ;;  %v256_v34 = vadd.s32 536870912, %v255_v56  ;;  %v995_v53 = vadd.s32 4294967169, %v719_v8 }
  0xde   :  { %v1053_v0 = vpop.eup %1052  ;;  %vm498_vm6 = vcmp.lt.s32.totalorder %v497_v25, 2  ;;  %vm502_vm7 = vcmp.eq.s32.totalorder %v497_v25, 2  ;;  %v170_v10 = vor.u32 4788187, %v169_v29  ;;  %v722_v4 = vand.u32 8388607, %v715_v2 }
  0xdf   :  { %v1055_v48 = vpop.eup %1054  ;;  %v503_v6 = vxor.u32 2147483648, %v1053_v0  ;;  %v257_v33 = vshrl.u32 %v256_v34, 30  ;;  %v725_v57 = vadd.s32 1, %v995_v53  ;;  %v822_v17 = vand.u32 2139095040, %v1478_v24 }
  0xe0   :  { %v500_v35 = vxor.u32 2147483648, %v1055_v48  ;;  %v171_v54 = vand.u32 2147483647, %v170_v10  ;;  %v173_v63 = vcvt.s32.f32 %v166_v51  ;;  %v184_v37 = vadd.s32 3, %v180_v23 }
  0xe1   :  { %vm499_vm8 = vcmp.eq.s32.totalorder %v497_v25, 0  ;;  %v504_v39 = vsel %vm502_vm7, %v503_v6, %v1055_v48  ;;  %v258_v40 = vshll.u32 %v257_v33, 30  ;;  %vm726_vm9 = vcmp.gt.s32.totalorder %v725_v57, 0 }
  0xe2   :  { %v501_v43 = vsel %vm499_vm8, %v1053_v0, %v500_v35  ;;  %v174_v28 = vmul.f32 %v173_v63, %v171_v54  ;;  %v723_v38 = vor.u32 8388608, %v722_v4  ;;  %v727_v60 = vsel %vm726_vm9, %v725_v57, 0 }
  0xe3   :  { %v505_v36 = vsel %vm498_vm6, %v501_v43, %v504_v39  ;;  %vm197_vm10 = vcmp.lt.s32.totalorder %v1189_v55, 0  ;;  %v1499_v52 = vsub.s32 %v255_v56, %v258_v40  ;;  %v823_v12 = vshrl.u32 %v822_v17, 23 }
  0xe4   :  { %v506_v13 = vsel %vm495_vm5, nan, %v505_v36  ;;  %v175_v22 = vxor.u32 2147483648, %v174_v28  ;;  %v1503_v44 = vand.u32 3, %v184_v37  ;;  %v729_v14 = vand.u32 31, %v727_v60 }
  0xe5   :  { %926 = vst [vmem:[#allocation2 + $0x18] sm:$0xff] %v506_v13  ;;  %v251_v27 = vadd.s32 %v1430_v26, %v1454_v32  ;;  %v261_v20 = vsub.s32 0, %v1499_v52  ;;  %v281_v25 = vsub.s32 4, %v257_v33  ;;  %v728_v21 = vshrl.u32 %v727_v60, 5 }
  0xe6   :  { %v176_v59 = vsel %vm93_vm11, %v175_v22, %v174_v28  ;;  %v730_v11 = vsub.s32 32, %v729_v14  ;;  %v1510_v47 = vshll.u32 %v723_v38, 8  ;;  %v819_v30 = vand.u32 2147483647, %v1478_v24 }
  0xe7   :  { %v179_v50 = vsel %vm1487_vm4, %v1177_v31, %v176_v59  ;;  %v976_v41 = vmin.u32 %v261_v20, %v1499_v52  ;;  %v732_v26 = vshll.u32 %v1103_v61, %v729_v14  ;;  %v999_v32 = vadd.s32 4294967169, %v823_v12 }
  0xe8   :  { %1056 = vcosq.f32 %v179_v50  ;;  %v733_v58 = vshrl.u32 %v1104_v1, %v730_v11  ;;  %v735_v45 = vshll.u32 %v1104_v1, %v729_v14  ;;  %v736_v62 = vshrl.u32 %v1105_v3, %v730_v11 }
  0xe9   :  { %1058 = vsinq.f32 %v179_v50  ;;  %v263_v56 = vclz %v976_v41  ;;  %v1523_v8 = vsel %vm197_vm10, %v281_v25, %v257_v33  ;;  %vm747_vm11 = vcmp.lt.s32.totalorder %v728_v21, 1 }
  0xea   :  { %v734_v46 = vor.u32 %v733_v58, %v732_v26  ;;  %v737_v51 = vor.u32 %v736_v62, %v735_v45  ;;  %v738_v29 = vshll.u32 %v1105_v3, %v729_v14  ;;  %v739_v23 = vshrl.u32 %v1106_v5, %v730_v11 }
  0xeb   :  { %v977_v34 = vadd.s32 4294967294, %v263_v56  ;;  %v731_v53 = vshrl.u32 %v1103_v61, %v730_v11  ;;  %v741_v0 = vshll.u32 %v1106_v5, %v729_v14  ;;  %v742_v10 = vshrl.u32 %v1107_v7, %v730_v11 }
  0xec   :  { %v740_v4 = vor.u32 %v739_v23, %v738_v29  ;;  %v744_v48 = vshll.u32 %v1107_v7, %v729_v14  ;;  %v745_v6 = vshrl.u32 %v1108_v16, %v730_v11  ;;  %vm749_vm12 = vcmp.lt.s32.totalorder %v728_v21, 3 }
  0xed   :  { %vm1534_vm13 = vcmp.le.f32.partialorder %v195_v49, 0.7853982  ;;  %vm978_vm14 = vcmp.lt.s32.totalorder %v977_v34, 0  ;;  %v743_v57 = vor.u32 %v742_v10, %v741_v0  ;;  %vm750_vm15 = vcmp.lt.s32.totalorder %v728_v21, 4 }
  0xee   :  { %v751_v17 = vsel %vm747_vm11, %v731_v53, %v734_v46  ;;  %v266_v35 = vsel %vm978_vm14, 0, %v977_v34  ;;  %v746_v54 = vor.u32 %v745_v6, %v744_v48  ;;  %v752_v63 = vsel %vm750_vm15, %v740_v4, 2102212464 }
  0xef   :  { %v755_v37 = vsel %vm747_vm11, %v734_v46, %v737_v51  ;;  %v267_v39 = vsub.s32 32, %v266_v35  ;;  %v271_v40 = vsub.s32 4294967266, %v266_v35  ;;  %v753_v43 = vsel %vm749_vm12, %v737_v51, %v752_v63 }
  0xf0   :  { %v759_v28 = vsel %vm747_vm11, %v737_v51, %v740_v4  ;;  %vm187_vm0 = vcmp.eq.s32.totalorder %v1503_v44, 0  ;;  %v268_v49 = vshll.u32 %v1499_v52, %v266_v35  ;;  %vm748_vm1 = vcmp.lt.s32.totalorder %v728_v21, 2 }
  0xf1   :  { %v756_v38 = vsel %vm750_vm15, %v743_v57, 920167782  ;;  %v760_v60 = vsel %vm750_vm15, %v746_v54, 1326507024  ;;  %vm186_vm2 = vcmp.lt.s32.totalorder %v1503_v44, 2  ;;  %v269_v36 = vshrl.u32 %v251_v27, %v267_v39 }
  0xf2   :  { %v272_v12 = vadd.s32 127, %v271_v40  ;;  %v757_v13 = vsel %vm749_vm12, %v740_v4, %v756_v38  ;;  %v761_v22 = vsel %vm749_vm12, %v743_v57, %v760_v60  ;;  %vm183_vm3 = vweird.f32 %v1177_v31 }
  0xf3   :  { %v754_v14 = vsel %vm748_vm1, %v751_v17, %v753_v43  ;;  %v758_v20 = vsel %vm748_vm1, %v755_v37, %v757_v13  ;;  %v762_v25 = vsel %vm748_vm1, %v759_v28, %v761_v22  ;;  %v829_v59 = vadd.s32 1, %v999_v32  ;;  %v1593_v22 = vpop.permute.xlu0 %75 }
  0xf4   :  { %v270_v11 = vor.u32 %v269_v36, %v268_v49  ;;  %v273_v50 = vshll.u32 %v272_v12, 23  ;;  %v1549_v52 = vmul.u32.u64.low %v1510_v47, %v762_v25  ;;  %v1550_v41 = vmul.u32.u64.high %v1510_v47, %v762_v25, %v1549_v52 }
  0xf5   :  { %vm190_vm4 = vcmp.eq.s32.totalorder %v1503_v44, 2  ;;  %v1554_v27 = vmul.u32.u64.low %v1510_v47, %v758_v20  ;;  %v1555_v26 = vmul.u32.u64.high %v1510_v47, %v758_v20, %v1554_v27  ;;  %vm830_vm5 = vcmp.gt.s32.totalorder %v829_v59, 0  ;;  %v1057_v21 = vpop.eup %1056 }
  0xf6   :  { %v274_v58 = vor.u32 4788187, %v273_v50  ;;  %v933_v45 = vcombine.low %v1177_v31, %v1189_v55  ;;  %v1562_v32 = vand.u32 8388607, %v819_v30  ;;  %v831_v62 = vsel %vm830_vm5, %v829_v59, 0  ;;  %v1059_v56 = vpop.eup %1058 }
  0xf7   :  { %v191_v46 = vxor.u32 2147483648, %v1057_v21  ;;  %v284_v51 = vsel %vm1534_vm13, 0, %v1523_v8  ;;  %v770_v29 = vmul.u32 %v1510_v47, %v754_v14  ;;  %v833_v23 = vand.u32 31, %v831_v62 }
  0xf8   :  { %v188_v34 = vxor.u32 2147483648, %v1059_v56  ;;  %v275_v53 = vand.u32 2147483647, %v274_v58  ;;  %v277_v0 = vcvt.s32.f32 %v270_v11  ;;  %vm772_vm6 = vc.u32 %v1550_v41, %v1554_v27 }
  0xf9   :  { %v192_v10 = vsel %vm190_vm4, %v191_v46, %v1059_v56  ;;  %v773_v4 = vadd.s32 1, %v1555_v26  ;;  %v1573_v48 = vshrl.u32 %v831_v62, 5  ;;  %v834_v6 = vsub.s32 32, %v833_v23 }
  0xfa   :  { %v189_v8 = vsel %vm187_vm0, %v1057_v21, %v188_v34  ;;  %v278_v57 = vmul.f32 %v277_v0, %v275_v53  ;;  %v836_v47 = vshll.u32 %v1103_v61, %v833_v23  ;;  %v839_v17 = vshll.u32 %v1104_v1, %v833_v23 }
  0xfb   :  { %v193_v35 = vsel %vm186_vm2, %v189_v8, %v192_v10  ;;  %v774_v54 = vsel %vm772_vm6, %v773_v4, %v1555_v26  ;;  %v837_v63 = vshrl.u32 %v1104_v1, %v834_v6  ;;  %v842_v37 = vshll.u32 %v1105_v3, %v833_v23 }
  0xfc   :  { %v194_v39 = vsel %vm183_vm3, nan, %v193_v35  ;;  %v279_v40 = vxor.u32 2147483648, %v278_v57  ;;  %v775_v43 = vadd.s32 %v774_v54, %v770_v29  ;;  %v840_v28 = vshrl.u32 %v1105_v3, %v834_v6 }
  0xfd   :  { %923 = vst [vmem:[#allocation2] sm:$0xff] %v194_v39  ;;  %v838_v49 = vor.u32 %v837_v63, %v836_v47  ;;  %v843_v38 = vshrl.u32 %v1106_v5, %v834_v6  ;;  %v845_v44 = vshll.u32 %v1106_v5, %v833_v23  ;;  %v846_v60 = vshrl.u32 %v1107_v7, %v834_v6 }
  0xfe   :  { %v280_v36 = vsel %vm197_vm10, %v279_v40, %v278_v57  ;;  %v776_v12 = vadd.s32 536870912, %v775_v43  ;;  %v841_v13 = vor.u32 %v840_v28, %v839_v17  ;;  %v848_v31 = vshll.u32 %v1107_v7, %v833_v23 }
  0xff   :  { %v283_v14 = vsel %vm1534_vm13, %v1189_v55, %v280_v36  ;;  %v844_v20 = vor.u32 %v843_v38, %v842_v37  ;;  %v847_v25 = vor.u32 %v846_v60, %v845_v44  ;;  %v849_v59 = vshrl.u32 %v1108_v16, %v834_v6 }
 0x100   :  { %1060 = vcosq.f32 %v283_v14  ;;  %v288_v11 = vadd.s32 3, %v284_v51  ;;  %v1600_v50 = vrot.slane %v933_v45, %v1483_v15  ;;  %v777_v52 = vshrl.u32 %v776_v12, 30 }
 0x101   :  { %1062 = vsinq.f32 %v283_v14  ;;  %v827_v26 = vor.u32 8388608, %v1562_v32  ;;  %v850_v21 = vor.u32 %v849_v59, %v848_v31  ;;  %v1605_v58 = vadd.f32 %v1593_v22, %v1165_v18 }
 0x102   :  { %v778_v33 = vshll.u32 %v777_v52, 30  ;;  %v835_v62 = vshrl.u32 %v1103_v61, %v834_v6  ;;  %vm851_vm7 = vcmp.lt.s32.totalorder %v1573_v48, 1  ;;  %vm854_vm8 = vcmp.lt.s32.totalorder %v1573_v48, 4 }
 0x103   :  { %vm853_vm9 = vcmp.lt.s32.totalorder %v1573_v48, 3  ;;  %v856_v45 = vsel %vm854_vm8, %v844_v20, 2102212464  ;;  %v859_v56 = vsel %vm851_vm7, %v838_v49, %v841_v13  ;;  %v860_v46 = vsel %vm854_vm8, %v847_v25, 920167782 }
 0x104   :  { %v1611_v51 = vsub.s32 %v775_v43, %v778_v33  ;;  %vm852_vm10 = vcmp.lt.s32.totalorder %v1573_v48, 2  ;;  %v861_v32 = vsel %vm853_vm9, %v844_v20, %v860_v46  ;;  %v863_v29 = vsel %vm851_vm7, %v841_v13, %v844_v20 }
 0x105   :  { %v289_v18 = vand.u32 3, %v288_v11  ;;  %v862_v23 = vsel %vm852_vm10, %v859_v56, %v861_v32  ;;  %v864_v34 = vsel %vm854_vm8, %v850_v21, 1326507024  ;;  %v867_v53 = vshll.u32 %v827_v26, 8 }
 0x106   :  { %v781_v0 = vsub.s32 0, %v1611_v51  ;;  %v855_v10 = vsel %vm851_vm7, %v835_v62, %v838_v49  ;;  %v857_v4 = vsel %vm853_vm9, %v841_v13, %v856_v45  ;;  %v865_v6 = vsel %vm853_vm9, %v847_v25, %v864_v34 }
 0x107   :  { %v801_v8 = vsub.s32 4, %v777_v52  ;;  %v866_v57 = vsel %vm852_vm10, %v863_v29, %v865_v6  ;;  %v1619_v47 = vmul.u32.u64.low %v867_v53, %v862_v23  ;;  %v1620_v17 = vmul.u32.u64.high %v867_v53, %v862_v23, %v1619_v47 }
 0x108   :  { %v996_v35 = vmin.u32 %v781_v0, %v1611_v51  ;;  %v1623_v54 = vmul.u32.u64.low %v867_v53, %v866_v57  ;;  %v1624_v63 = vmul.u32.u64.high %v867_v53, %v866_v57, %v1623_v54  ;;  %v507_v37 = vand.u32 2147483647, %v1605_v58 }
 0x109   :  { %vm717_vm11 = vcmp.lt.s32.totalorder %v1448_v42, 0  ;;  %v858_v39 = vsel %vm852_vm10, %v855_v10, %v857_v4  ;;  %v510_v40 = vand.u32 2139095040, %v1605_v58  ;;  %vm1632_vm12 = vcmp.lt.s32.totalorder %v45_v9, 256 }
 0x10a   :  { %vm287_vm13 = vweird.f32 %v1189_v55  ;;  %vm290_vm14 = vcmp.lt.s32.totalorder %v289_v18, 2  ;;  %v947_v28 = vrot.slane %v1600_v50, %v1483_v15  ;;  %vm1641_vm15 = vcmp.le.f32.partialorder %v715_v2, 0.7853982 }
 0x10b   :  { %v783_v48 = vclz %v996_v35  ;;  %vm291_vm0 = vcmp.eq.s32.totalorder %v289_v18, 0  ;;  %v802_v9 = vsel %vm717_vm11, %v801_v8, %v777_v52  ;;  %v877_v38 = vadd.s32 1, %v1620_v17 }
 0x10c   :  { %v511_v44 = vshrl.u32 %v510_v40, 23  ;;  %v874_v36 = vmul.u32 %v867_v53, %v858_v39  ;;  %vm876_vm1 = vc.u32 %v1624_v63, %v1619_v47  ;;  %v514_v15 = vand.u32 8388607, %v507_v37 }
 0x10d   :  { %v997_v60 = vadd.s32 4294967294, %v783_v48  ;;  %v1061_v12 = vpop.eup %1060  ;;  %vm294_vm2 = vcmp.eq.s32.totalorder %v289_v18, 2  ;;  %v771_v2 = vadd.s32 %v1554_v27, %v1550_v41  ;;  %v878_v13 = vsel %vm876_vm1, %v877_v38, %v1620_v17 }
 0x10e   :  { %v987_v31 = vadd.s32 4294967169, %v511_v44  ;;  %v1063_v14 = vpop.eup %1062  ;;  %v295_v20 = vxor.u32 2147483648, %v1061_v12  ;;  %v804_v25 = vsel %vm1641_vm15, 0, %v802_v9  ;;  %v879_v59 = vadd.s32 %v878_v13, %v874_v36 }
 0x10f   :  { %vm998_vm3 = vcmp.lt.s32.totalorder %v997_v60, 0  ;;  %v292_v11 = vxor.u32 2147483648, %v1063_v14  ;;  %v1658_v52 = vadd.f32 %v1593_v22, %v1167_v19  ;;  %v515_v27 = vor.u32 8388608, %v514_v15 }
 0x110   :  { %v786_v50 = vsel %vm998_vm3, 0, %v997_v60  ;;  %v517_v26 = vadd.s32 1, %v987_v31  ;;  %v296_v21 = vsel %vm294_vm2, %v295_v20, %v1063_v14  ;;  %v880_v56 = vadd.s32 536870912, %v879_v59 }
 0x111   :  { %v787_v33 = vsub.s32 32, %v786_v50  ;;  %v791_v41 = vsub.s32 4294967266, %v786_v50  ;;  %v293_v62 = vsel %vm291_vm0, %v1061_v12, %v292_v11  ;;  %v788_v45 = vshll.u32 %v1611_v51, %v786_v50 }
 0x112   :  { %vm518_vm4 = vcmp.gt.s32.totalorder %v517_v26, 0  ;;  %v297_v46 = vsel %vm290_vm14, %v293_v62, %v296_v21  ;;  %v1665_v22 = vshrl.u32 %v880_v56, 30  ;;  %v614_v53 = vand.u32 2139095040, %v1658_v52 }
 0x113   :  { %v789_v32 = vshrl.u32 %v771_v2, %v787_v33  ;;  %v792_v29 = vadd.s32 127, %v791_v41  ;;  %v519_v23 = vsel %vm518_vm4, %v517_v26, 0  ;;  %v298_v19 = vsel %vm287_vm13, nan, %v297_v46 }
 0x114   :  { %v521_v34 = vand.u32 31, %v519_v23  ;;  %924 = vst [vmem:[#allocation2 + $0x8] sm:$0xff] %v298_v19  ;;  %v882_v51 = vshll.u32 %v1665_v22, 30  ;;  %v1671_v6 = vadd.s32 3, %v804_v25  ;;  %v875_v55 = vadd.s32 %v1619_v47, %v1624_v63 }
 0x115   :  { %v790_v0 = vor.u32 %v789_v32, %v788_v45  ;;  %v793_v10 = vshll.u32 %v792_v29, 23  ;;  %953 = vst.msk [vmem:[#allocation2] ss:$8 sm:$0x3] %vm1632_vm12, %v947_v28  ;;  %v1677_v17 = vshll.u32 %v515_v27, 8  ;;  %v615_v35 = vshrl.u32 %v614_v53, 23 }
 0x116   :  { %v522_v18 = vsub.s32 32, %v521_v34  ;;  %v1674_v8 = vsub.s32 %v879_v59, %v882_v51  ;;  %v520_v48 = vshrl.u32 %v519_v23, 5  ;;  %v524_v9 = vshll.u32 %v1103_v61, %v521_v34 }
 0x117   :  { %v794_v4 = vor.u32 4788187, %v793_v10  ;;  %v797_v39 = vcvt.s32.f32 %v790_v0  ;;  %v527_v47 = vshll.u32 %v1104_v1, %v521_v34  ;;  %v530_v38 = vshll.u32 %v1105_v3, %v521_v34 }
 0x118   :  { %v525_v57 = vshrl.u32 %v1104_v1, %v522_v18  ;;  %v528_v40 = vshrl.u32 %v1105_v3, %v522_v18  ;;  %v531_v43 = vshrl.u32 %v1106_v5, %v522_v18  ;;  %v885_v28 = vsub.s32 0, %v1674_v8 }
 0x119   :  { %v795_v54 = vand.u32 2147483647, %v794_v4  ;;  %v533_v44 = vshll.u32 %v1106_v5, %v521_v34  ;;  %v534_v60 = vshrl.u32 %v1107_v7, %v522_v18  ;;  %v537_v2 = vshrl.u32 %v1108_v16, %v522_v18 }
 0x11a   :  { %v1000_v36 = vmin.u32 %v885_v28, %v1674_v8  ;;  %v526_v15 = vor.u32 %v525_v57, %v524_v9  ;;  %v529_v12 = vor.u32 %v528_v40, %v527_v47  ;;  %v532_v31 = vor.u32 %v531_v43, %v530_v38 }
 0x11b   :  { %v798_v63 = vmul.f32 %v797_v39, %v795_v54  ;;  %v535_v14 = vor.u32 %v534_v60, %v533_v44  ;;  %v536_v20 = vshll.u32 %v1107_v7, %v521_v34  ;;  %v905_v59 = vsub.s32 4, %v1665_v22 }
 0x11c   :  { %v887_v25 = vclz %v1000_v36  ;;  %v523_v11 = vshrl.u32 %v1103_v61, %v522_v18  ;;  %v991_v50 = vadd.s32 4294967169, %v615_v35  ;;  %vm539_vm5 = vcmp.lt.s32.totalorder %v520_v48, 1 }
 0x11d   :  { %v799_v13 = vxor.u32 2147483648, %v798_v63  ;;  %v538_v21 = vor.u32 %v537_v2, %v536_v20  ;;  %vm540_vm6 = vcmp.lt.s32.totalorder %v520_v48, 2  ;;  %vm541_vm7 = vcmp.lt.s32.totalorder %v520_v48, 3 }
 0x11e   :  { %v1001_v41 = vadd.s32 4294967294, %v887_v25  ;;  %vm542_vm8 = vcmp.lt.s32.totalorder %v520_v48, 4  ;;  %v547_v62 = vsel %vm539_vm5, %v526_v15, %v529_v12  ;;  %v543_v56 = vsel %vm539_vm5, %v523_v11, %v526_v15 }
 0x11f   :  { %v800_v26 = vsel %vm717_vm11, %v799_v13, %v798_v63  ;;  %v544_v27 = vsel %vm542_vm8, %v532_v31, 2102212464  ;;  %v548_v45 = vsel %vm542_vm8, %v535_v14, 920167782  ;;  %v551_v49 = vsel %vm539_vm5, %v529_v12, %v532_v31 }
 0x120   :  { %v803_v33 = vsel %vm1641_vm15, %v1448_v42, %v800_v26  ;;  %vm1002_vm9 = vcmp.lt.s32.totalorder %v1001_v41, 0  ;;  %v549_v46 = vsel %vm541_vm7, %v532_v31, %v548_v45  ;;  %v552_v23 = vsel %vm542_vm8, %v538_v21, 1326507024 }
 0x121   :  { %1064 = vcosq.f32 %v803_v33  ;;  %v890_v32 = vsel %vm1002_vm9, 0, %v1001_v41  ;;  %v550_v29 = vsel %vm540_vm6, %v547_v62, %v549_v46  ;;  %v545_v53 = vsel %vm541_vm7, %v529_v12, %v544_v27 }
 0x122   :  { %1066 = vsinq.f32 %v803_v33  ;;  %v891_v19 = vsub.s32 32, %v890_v32  ;;  %v895_v34 = vsub.s32 4294967266, %v890_v32  ;;  %v553_v0 = vsel %vm541_vm7, %v535_v14, %v552_v23 }
 0x123   :  { %v892_v10 = vshll.u32 %v1674_v8, %v890_v32  ;;  %v554_v51 = vsel %vm540_vm6, %v551_v49, %v553_v0  ;;  %v1707_v18 = vmul.u32.u64.low %v1677_v17, %v550_v29  ;;  %v1708_v4 = vmul.u32.u64.high %v1677_v17, %v550_v29, %v1707_v18 }
 0x124   :  { %v893_v57 = vshrl.u32 %v875_v55, %v891_v19  ;;  %v896_v35 = vadd.s32 127, %v895_v34  ;;  %v1712_v54 = vmul.u32.u64.low %v1677_v17, %v554_v51  ;;  %v1713_v39 = vmul.u32.u64.high %v1677_v17, %v554_v51, %v1712_v54 }
 0x125   :  { %vm821_vm10 = vcmp.lt.s32.totalorder %v1478_v24, 0  ;;  %v546_v40 = vsel %vm540_vm6, %v543_v56, %v545_v53  ;;  %v611_v43 = vand.u32 2147483647, %v1658_v52  ;;  %v621_v8 = vadd.s32 1, %v991_v50 }
 0x126   :  { %v894_v28 = vor.u32 %v893_v57, %v892_v10  ;;  %v897_v9 = vshll.u32 %v896_v35, 23  ;;  %v906_v47 = vsel %vm821_vm10, %v905_v59, %v1665_v22  ;;  %v809_v55 = vand.u32 3, %v1671_v6 }
 0x127   :  { %v565_v63 = vadd.s32 1, %v1708_v4  ;;  %vm622_vm11 = vcmp.gt.s32.totalorder %v621_v8, 0  ;;  %vm1725_vm12 = vcmp.le.f32.partialorder %v819_v30, 0.7853982  ;;  %v562_v44 = vmul.u32 %v1677_v17, %v546_v40 }
 0x128   :  { %v898_v48 = vor.u32 4788187, %v897_v9  ;;  %vm564_vm13 = vc.u32 %v1713_v39, %v1707_v18  ;;  %v908_v22 = vsel %vm1725_vm12, 0, %v906_v47  ;;  %v618_v60 = vand.u32 8388607, %v611_v43 }
 0x129   :  { %v566_v6 = vsel %vm564_vm13, %v565_v63, %v1708_v4  ;;  %v623_v36 = vsel %vm622_vm11, %v621_v8, 0  ;;  %v901_v30 = vcvt.s32.f32 %v894_v28  ;;  %vm807_vm14 = vweird.f32 %v1448_v42 }
 0x12a   :  { %v899_v15 = vand.u32 2147483647, %v898_v48  ;;  %v567_v12 = vadd.s32 %v566_v6, %v562_v44  ;;  %v625_v2 = vand.u32 31, %v623_v36  ;;  %vm810_vm15 = vcmp.lt.s32.totalorder %v809_v55, 2 }
 0x12b   :  { %vm811_vm0 = vcmp.eq.s32.totalorder %v809_v55, 0  ;;  %vm814_vm1 = vcmp.eq.s32.totalorder %v809_v55, 2  ;;  %v912_v59 = vadd.s32 3, %v908_v22  ;;  %v619_v11 = vor.u32 8388608, %v618_v60 }
 0x12c   :  { %v902_v13 = vmul.f32 %v901_v30, %v899_v15  ;;  %v568_v31 = vadd.s32 536870912, %v567_v12  ;;  %v626_v14 = vsub.s32 32, %v625_v2  ;;  %v624_v33 = vshrl.u32 %v623_v36, 5 }
 0x12d   :  { %v628_v27 = vshll.u32 %v1103_v61, %v625_v2  ;;  %v631_v19 = vshll.u32 %v1104_v1, %v625_v2  ;;  %v634_v34 = vshll.u32 %v1105_v3, %v625_v2  ;;  %v637_v10 = vshll.u32 %v1106_v5, %v625_v2 }
 0x12e   :  { %v1065_v17 = vpop.eup %1064  ;;  %v903_v26 = vxor.u32 2147483648, %v902_v13  ;;  %v1738_v21 = vshrl.u32 %v568_v31, 30  ;;  %v629_v62 = vshrl.u32 %v1104_v1, %v626_v14  ;;  %v632_v45 = vshrl.u32 %v1105_v3, %v626_v14 }
 0x12f   :  { %v1067_v20 = vpop.eup %1066  ;;  %v815_v25 = vxor.u32 2147483648, %v1065_v17  ;;  %v635_v29 = vshrl.u32 %v1106_v5, %v626_v14  ;;  %v638_v57 = vshrl.u32 %v1107_v7, %v626_v14  ;;  %v640_v40 = vshll.u32 %v1107_v7, %v625_v2 }
 0x130   :  { %v812_v50 = vxor.u32 2147483648, %v1067_v20  ;;  %v904_v46 = vsel %vm821_vm10, %v903_v26, %v902_v13  ;;  %v570_v32 = vshll.u32 %v1738_v21, 30  ;;  %v630_v51 = vor.u32 %v629_v62, %v628_v27 }
 0x131   :  { %v816_v41 = vsel %vm814_vm1, %v815_v25, %v1067_v20  ;;  %v907_v23 = vsel %vm1725_vm12, %v1478_v24, %v904_v46  ;;  %v633_v4 = vor.u32 %v632_v45, %v631_v19  ;;  %v636_v54 = vor.u32 %v635_v29, %v634_v34 }
 0x132   :  { %v813_v56 = vsel %vm811_vm0, %v1065_v17, %v812_v50  ;;  %1068 = vcosq.f32 %v907_v23  ;;  %v571_v0 = vsub.s32 %v567_v12, %v570_v32  ;;  %v641_v1 = vshrl.u32 %v1108_v16, %v626_v14 }
 0x133   :  { %v817_v49 = vsel %vm810_vm15, %v813_v56, %v816_v41  ;;  %1070 = vsinq.f32 %v907_v23  ;;  %v639_v3 = vor.u32 %v638_v57, %v637_v10  ;;  %vm643_vm2 = vcmp.lt.s32.totalorder %v624_v33, 1 }
 0x134   :  { %v818_v53 = vsel %vm807_vm14, nan, %v817_v49  ;;  %v573_v35 = vsub.s32 0, %v571_v0  ;;  %v642_v42 = vor.u32 %v641_v1, %v640_v40  ;;  %vm646_vm3 = vcmp.lt.s32.totalorder %v624_v33, 4 }
 0x135   :  { %929 = vst [vmem:[#allocation2 + $0x30] sm:$0xff] %v818_v53  ;;  %v913_v28 = vand.u32 3, %v912_v59  ;;  %v651_v9 = vsel %vm643_vm2, %v630_v51, %v633_v4  ;;  %v652_v5 = vsel %vm646_vm3, %v639_v3, 920167782  ;;  %v659_v47 = vshll.u32 %v619_v11, 8 }
 0x136   :  { %v988_v8 = vmin.u32 %v573_v35, %v571_v0  ;;  %v627_v63 = vshrl.u32 %v1103_v61, %v626_v14  ;;  %vm645_vm4 = vcmp.lt.s32.totalorder %v624_v33, 3  ;;  %v648_v38 = vsel %vm646_vm3, %v636_v54, 2102212464 }
 0x137   :  { %vm644_vm5 = vcmp.lt.s32.totalorder %v624_v33, 2  ;;  %v653_v48 = vsel %vm645_vm4, %v636_v54, %v652_v5  ;;  %v655_v44 = vsel %vm643_vm2, %v633_v4, %v636_v54  ;;  %v656_v7 = vsel %vm646_vm3, %v642_v42, 1326507024 }
 0x138   :  { %v575_v55 = vclz %v988_v8  ;;  %v647_v16 = vsel %vm643_vm2, %v627_v63, %v630_v51  ;;  %v654_v6 = vsel %vm644_vm5, %v651_v9, %v653_v48  ;;  %v657_v60 = vsel %vm645_vm4, %v639_v3, %v656_v7 }
 0x139   :  { %v649_v36 = vsel %vm645_vm4, %v633_v4, %v648_v38  ;;  %v658_v15 = vsel %vm644_vm5, %v655_v44, %v657_v60  ;;  %v1763_v30 = vmul.u32.u64.low %v659_v47, %v654_v6  ;;  %v1764_v12 = vmul.u32.u64.high %v659_v47, %v654_v6, %v1763_v30 }
 0x13a   :  { %v989_v22 = vadd.s32 4294967294, %v575_v55  ;;  %v1766_v2 = vmul.u32.u64.low %v659_v47, %v658_v15  ;;  %v1767_v61 = vmul.u32.u64.high %v659_v47, %v658_v15, %v1766_v2  ;;  %v563_v13 = vadd.s32 %v1707_v18, %v1713_v39 }
 0x13b   :  { %v650_v20 = vsel %vm644_vm5, %v647_v16, %v649_v36  ;;  %vm915_vm7 = vcmp.eq.s32.totalorder %v913_v28, 0  ;;  %v669_v59 = vadd.s32 1, %v1764_v12  ;;  %vm918_vm8 = vcmp.eq.s32.totalorder %v913_v28, 2 }
 0x13c   :  { %vm990_vm6 = vcmp.lt.s32.totalorder %v989_v22, 0  ;;  %v666_v45 = vmul.u32 %v659_v47, %v650_v20  ;;  %vm668_vm9 = vc.u32 %v1767_v61, %v1763_v30  ;;  %vm914_vm10 = vcmp.lt.s32.totalorder %v913_v28, 2 }
 0x13d   :  { %v578_v17 = vsel %vm990_vm6, 0, %v989_v22  ;;  %v670_v33 = vsel %vm668_vm9, %v669_v59, %v1764_v12  ;;  %vm911_vm11 = vweird.f32 %v1478_v24  ;;  %vm509_vm12 = vcmp.lt.s32.totalorder %v1605_v58, 0 }
 0x13e   :  { %v579_v31 = vsub.s32 32, %v578_v17  ;;  %v583_v14 = vsub.s32 4294967266, %v578_v17  ;;  %v580_v26 = vshll.u32 %v571_v0, %v578_v17  ;;  %v671_v32 = vadd.s32 %v670_v33, %v666_v45 }
 0x13f   :  { %v1069_v25 = vpop.eup %1068  ;;  %v593_v57 = vsub.s32 4, %v1738_v21  ;;  %vm508_vm13 = vcmp.le.f32.partialorder %v507_v37, 0.7853982  ;;  %v667_v47 = vadd.s32 %v1763_v30, %v1767_v61  ;;  %vm599_vm2 = vweird.f32 %v1605_v58 }
 0x140   :  { %v1071_v11 = vpop.eup %1070  ;;  %v919_v50 = vxor.u32 2147483648, %v1069_v25  ;;  %v581_v41 = vshrl.u32 %v563_v13, %v579_v31  ;;  %v584_v27 = vadd.s32 127, %v583_v14  ;;  %v672_v19 = vadd.s32 536870912, %v671_v32 }
 0x141   :  { %v916_v62 = vxor.u32 2147483648, %v1071_v11  ;;  %v594_v1 = vsel %vm509_vm12, %v593_v57, %v1738_v21  ;;  %vm613_vm3 = vcmp.lt.s32.totalorder %v1658_v52, 0  ;;  %vm612_vm4 = vcmp.le.f32.partialorder %v611_v43, 0.7853982 }
 0x142   :  { %v920_v56 = vsel %vm918_vm8, %v919_v50, %v1071_v11  ;;  %v582_v18 = vor.u32 %v581_v41, %v580_v26  ;;  %v585_v39 = vshll.u32 %v584_v27, 23  ;;  %v673_v0 = vshrl.u32 %v672_v19, 30 }
 0x143   :  { %v917_v46 = vsel %vm915_vm7, %v1069_v25, %v916_v62  ;;  %v596_v42 = vsel %vm508_vm13, 0, %v594_v1  ;;  %vm703_vm8 = vweird.f32 %v1658_v52 }
 0x144   :  { %v921_v29 = vsel %vm914_vm10, %v917_v46, %v920_v56  ;;  %v586_v49 = vor.u32 4788187, %v585_v39  ;;  %v589_v53 = vcvt.s32.f32 %v582_v18  ;;  %v674_v51 = vshll.u32 %v673_v0, 30 }
 0x145   :  { %v922_v23 = vsel %vm911_vm11, nan, %v921_v29  ;;  %v600_v9 = vadd.s32 3, %v596_v42  ;;  %v697_v14 = vsub.s32 4, %v673_v0 }
 0x146   :  { %930 = vst [vmem:[#allocation2 + $0x38] sm:$0xff] %v922_v23  ;;  %v587_v34 = vand.u32 2147483647, %v586_v49  ;;  %v675_v35 = vsub.s32 %v671_v32, %v674_v51 }
 0x147   :  { %v601_v37 = vand.u32 3, %v600_v9  ;;  %v698_v59 = vsel %vm613_vm3, %v697_v14, %v673_v0 }
 0x148   :  { %v590_v10 = vmul.f32 %v589_v53, %v587_v34  ;;  %v677_v40 = vsub.s32 0, %v675_v35  ;;  %v700_v11 = vsel %vm612_vm4, 0, %v698_v59 }
 0x149   :  { %vm606_vm15 = vcmp.eq.s32.totalorder %v601_v37, 2  ;;  %vm603_vm0 = vcmp.eq.s32.totalorder %v601_v37, 0  ;;  %vm602_vm1 = vcmp.lt.s32.totalorder %v601_v37, 2  ;;  %v704_v50 = vadd.s32 3, %v700_v11 }
 0x14a   :  { %v591_v4 = vxor.u32 2147483648, %v590_v10  ;;  %v992_v3 = vmin.u32 %v677_v40, %v675_v35 }
 0x14c   :  { %v592_v24 = vsel %vm509_vm12, %v591_v4, %v590_v10  ;;  %v679_v8 = vclz %v992_v3 }
 0x14d   :  { %v595_v54 = vsel %vm508_vm13, %v1605_v58, %v592_v24  ;;  %v705_v58 = vand.u32 3, %v704_v50 }
 0x14e   :  { %1072 = vcosq.f32 %v595_v54  ;;  %v993_v28 = vadd.s32 4294967294, %v679_v8 }
 0x14f   :  { %1074 = vsinq.f32 %v595_v54  ;;  %vm710_vm5 = vcmp.eq.s32.totalorder %v705_v58, 2  ;;  %vm707_vm6 = vcmp.eq.s32.totalorder %v705_v58, 0  ;;  %vm706_vm7 = vcmp.lt.s32.totalorder %v705_v58, 2 }
 0x150   :  { %vm994_vm14 = vcmp.lt.s32.totalorder %v993_v28, 0 }
 0x151   :  { %v682_v5 = vsel %vm994_vm14, 0, %v993_v28 }
 0x152   :  { %v683_v55 = vsub.s32 32, %v682_v5  ;;  %v687_v63 = vsub.s32 4294967266, %v682_v5  ;;  %v684_v38 = vshll.u32 %v675_v35, %v682_v5 }
 0x154   :  { %v685_v48 = vshrl.u32 %v667_v47, %v683_v55  ;;  %v688_v44 = vadd.s32 127, %v687_v63 }
 0x156   :  { %v686_v22 = vor.u32 %v685_v48, %v684_v38  ;;  %v689_v16 = vshll.u32 %v688_v44, 23 }
 0x158   :  { %v690_v36 = vor.u32 4788187, %v689_v16  ;;  %v693_v30 = vcvt.s32.f32 %v686_v22 }
 0x15a   :  { %v691_v2 = vand.u32 2147483647, %v690_v36 }
 0x15b   :  { %v1073_v7 = vpop.eup %1072 }
 0x15c   :  { %v1075_v21 = vpop.eup %1074  ;;  %v607_v6 = vxor.u32 2147483648, %v1073_v7  ;;  %v694_v13 = vmul.f32 %v693_v30, %v691_v2 }
 0x15d   :  { %v604_v60 = vxor.u32 2147483648, %v1075_v21 }
 0x15e   :  { %v608_v15 = vsel %vm606_vm15, %v607_v6, %v1075_v21  ;;  %v695_v31 = vxor.u32 2147483648, %v694_v13 }
 0x15f   :  { %v605_v12 = vsel %vm603_vm0, %v1073_v7, %v604_v60 }
 0x160   :  { %v609_v61 = vsel %vm602_vm1, %v605_v12, %v608_v15  ;;  %v696_v20 = vsel %vm613_vm3, %v695_v31, %v694_v13 }
 0x161   :  { %v610_v17 = vsel %vm599_vm2, nan, %v609_v61  ;;  %v699_v25 = vsel %vm612_vm4, %v1658_v52, %v696_v20 }
 0x162   :  { %927 = vst [vmem:[#allocation2 + $0x20] sm:$0xff] %v610_v17  ;;  %1076 = vcosq.f32 %v699_v25 }
 0x163   :  { %1078 = vsinq.f32 %v699_v25 }
 0x16f   :  { %v1077_v26 = vpop.eup %1076 }
 0x170   :  { %v1079_v41 = vpop.eup %1078  ;;  %v711_v27 = vxor.u32 2147483648, %v1077_v26 }
 0x171   :  { %v708_v62 = vxor.u32 2147483648, %v1079_v41 }
 0x172   :  { %v712_v45 = vsel %vm710_vm5, %v711_v27, %v1079_v41 }
 0x173   :  { %v709_v43 = vsel %vm707_vm6, %v1077_v26, %v708_v62 }
 0x174   :  { %v713_v56 = vsel %vm706_vm7, %v709_v43, %v712_v45 }
 0x175   :  { %v714_v18 = vsel %vm703_vm8, nan, %v713_v56 }
 0x176   :  { %928 = vst [vmem:[#allocation2 + $0x28] sm:$0xff] %v714_v18 }
 0x177   :  { %1091 = shalt.err (!%p1088_p4)
}
 0x178   :  { %s1111_s30 = smov 256   ;;  %s1112_s4 = smov 16  }
 0x179   :  { %966 = dma.vmem_to_hbm [thread:$0]  %s961_s2, 1024, %s1796_s3, [#allocation3], %s1111_s30, %s1111_s30, %s1112_s4  }
 0x17a   :  { %1100 = dma.done.wait [#allocation3], 1024  }
 0x17b   :  { %1101 = vsyncadd [#allocation3], 4294966272 }
 0x17c   :  { %970 = vsyncpa [#allocation3], 1 }

</bundles_post_ra>
